<compile_context>
chip_gen: v7x
topology: tpu7x:2x2x1
jax: 0.10.0
libtpu: 0.0.40
codegen_flags: <defaults>
</compile_context>

<pallas_src>
import math
from types import SimpleNamespace

import jax
import jax.numpy as jnp
from jax.experimental import pallas as pl
from jax.experimental.pallas import tpu as pltpu


# Scoped-VMEM budget for every pallas_call.  Safe on v7x (64 MiB physical);
# on v5e/v6e (128 MiB) this can be raised and tiles swept larger.
_VMEM_LIMIT = 48 * 1024 * 1024


# ----------------------------------------------------------------------------- helpers
def _gelu_tanh(x):
    c = math.sqrt(2.0 / math.pi)
    return 0.5 * x * (1.0 + jnp.tanh(c * (x + 0.044715 * x * x * x)))


def _tile(dim, preferred, align):
    """Largest tile <= preferred that is a multiple of `align` and divides `dim`,
    otherwise the full dim (used for weight N/K dims, which are layout-friendly)."""
    if dim <= preferred or dim % align != 0:
        return dim
    t = min(preferred, dim)
    t -= t % align
    while t >= align:
        if dim % t == 0:
            return t
        t -= align
    return dim


def _row_plan(M, preferred):
    """Row (M) tiling with padding instead of a full-extent fallback: returns
    (tm, Mp) with tm a multiple of 8, Mp a multiple of tm, Mp >= M."""
    preferred = max(8, preferred - preferred % 8)
    if M <= preferred:
        tm = ((M + 7) // 8) * 8
    else:
        tm = preferred
    Mp = ((M + tm - 1) // tm) * tm
    return tm, Mp


def _pad_rows(a, Mp):
    M = a.shape[0]
    return a if M == Mp else jnp.pad(a, ((0, Mp - M), (0, 0)))


# ----------------------------------------------------------------------------- tiled matmul (+bias/residual/GELU)
def _make_matmul_kernel(use_gelu, has_residual):
    def kernel(x_ref, w_ref, b_ref, *rest):
        if has_residual:
            r_ref, o_ref, acc_ref = rest
        else:
            o_ref, acc_ref = rest

        @pl.when(pl.program_id(2) == 0)
        def _():
            acc_ref[...] = jnp.zeros_like(acc_ref)

        acc_ref[...] += jnp.dot(x_ref[...], w_ref[...],
                                preferred_element_type=jnp.float32)

        @pl.when(pl.program_id(2) == pl.num_programs(2) - 1)
        def _():
            y = acc_ref[...] + b_ref[...]
            if has_residual:
                y = y + r_ref[...].astype(jnp.float32)
            if use_gelu:
                y = _gelu_tanh(y)
            o_ref[...] = y.astype(o_ref.dtype)

    return kernel


def matmul_bias(x, w, b, *, gelu=False, residual=None, out_dtype=jnp.float32,
                tm=512, tn=256, tk=512):
    """y = act(x @ w + b [+ residual]).  x:(M,K) (pre-cast bf16), w:(K,N) bf16, b:(N,).
    Tile defaults fit the v7x 64 MiB budget; on v5e/v6e sweep tm=512/tk=1024/tn=512."""
    M, K = x.shape
    N = w.shape[1]
    tm, Mp = _row_plan(M, tm)
    tn = _tile(N, tn, 128)
    tk = _tile(K, tk, 128)
    xb = _pad_rows(x.astype(jnp.bfloat16), Mp)   # bf16 LHS in HBM: halves DMA bytes
    inputs = [xb, w.astype(jnp.bfloat16), b.reshape(1, N).astype(jnp.float32)]
    in_specs = [
        pl.BlockSpec((tm, tk), lambda i, j, k: (i, k)),
        pl.BlockSpec((tk, tn), lambda i, j, k: (k, j)),
        pl.BlockSpec((1, tn), lambda i, j, k: (0, j)),
    ]
    if residual is not None:
        inputs.append(_pad_rows(residual, Mp))
        in_specs.append(pl.BlockSpec((tm, tn), lambda i, j, k: (i, j)))
    y = pl.pallas_call(
        _make_matmul_kernel(gelu, residual is not None),
        grid=(Mp // tm, N // tn, K // tk),
        in_specs=in_specs,
        out_specs=pl.BlockSpec((tm, tn), lambda i, j, k: (i, j)),
        out_shape=jax.ShapeDtypeStruct((Mp, N), out_dtype),
        scratch_shapes=[pltpu.VMEM((tm, tn), jnp.float32)],
        compiler_params=pltpu.CompilerParams(
            dimension_semantics=("parallel", "parallel", "arbitrary"),
            vmem_limit_bytes=_VMEM_LIMIT),
    )(*inputs)
    return y[:M] if Mp != M else y


# ----------------------------------------------------------------------------- fused LayerNorm + matmul (LN cached across N tiles)
def _make_ln_matmul_kernel(use_gelu):
    def kernel(x_ref, g_ref, bln_ref, w_ref, b_ref, o_ref, xn_ref):
        # LN of the (tm, K) row block is computed once per row block (j == 0)
        # and cached as bf16 in VMEM scratch; all N-tiles (j) feed the MXU from it.
        @pl.when(pl.program_id(1) == 0)
        def _():
            x = x_ref[...].astype(jnp.float32)
            mu = jnp.mean(x, axis=-1, keepdims=True)
            xc = x - mu
            var = jnp.mean(xc * xc, axis=-1, keepdims=True)
            xn = xc * jax.lax.rsqrt(var + 1e-5) * g_ref[...] + bln_ref[...]
            xn_ref[...] = xn.astype(jnp.bfloat16)

        y = jnp.dot(xn_ref[...], w_ref[...],
                    preferred_element_type=jnp.float32) + b_ref[...]
        if use_gelu:
            y = _gelu_tanh(y)
        o_ref[...] = y.astype(o_ref.dtype)

    return kernel


def ln_matmul_bias(x, g, bln, w, b, *, gelu=False, out_dtype=jnp.float32,
                   tm=256, tn=512):
    """y = act(LayerNorm(x) @ w + b).  K (=C) kept un-tiled so LN sees full rows."""
    M, K = x.shape
    N = w.shape[1]
    tm, Mp = _row_plan(M, tm)
    tn = _tile(N, tn, 128)
    xp = _pad_rows(x, Mp)
    y = pl.pallas_call(
        _make_ln_matmul_kernel(gelu),
        grid=(Mp // tm, N // tn),
        in_specs=[
            pl.BlockSpec((tm, K), lambda i, j: (i, 0)),
            pl.BlockSpec((1, K), lambda i, j: (0, 0)),
            pl.BlockSpec((1, K), lambda i, j: (0, 0)),
            pl.BlockSpec((K, tn), lambda i, j: (0, j)),
            pl.BlockSpec((1, tn), lambda i, j: (0, j)),
        ],
        out_specs=pl.BlockSpec((tm, tn), lambda i, j: (i, j)),
        out_shape=jax.ShapeDtypeStruct((Mp, N), out_dtype),
        scratch_shapes=[pltpu.VMEM((tm, K), jnp.bfloat16)],
        compiler_params=pltpu.CompilerParams(
            dimension_semantics=("parallel", "arbitrary"),
            vmem_limit_bytes=_VMEM_LIMIT),
    )(xp, g.reshape(1, K).astype(jnp.float32), bln.reshape(1, K).astype(jnp.float32),
      w.astype(jnp.bfloat16), b.reshape(1, N).astype(jnp.float32))
    return y[:M] if Mp != M else y


# ----------------------------------------------------------------------------- standalone LayerNorm (ln_f)
def _layernorm_kernel(x_ref, g_ref, b_ref, o_ref):
    x = x_ref[...].astype(jnp.float32)
    mu = jnp.mean(x, axis=-1, keepdims=True)
    xc = x - mu
    var = jnp.mean(xc * xc, axis=-1, keepdims=True)
    o_ref[...] = (xc * jax.lax.rsqrt(var + 1e-5) * g_ref[...] + b_ref[...]).astype(o_ref.dtype)


def layer_norm(x, g, b, *, tm=512):
    M, C = x.shape
    tm, Mp = _row_plan(M, tm)
    xp = _pad_rows(x, Mp)
    y = pl.pallas_call(
        _layernorm_kernel,
        grid=(Mp // tm,),
        in_specs=[pl.BlockSpec((tm, C), lambda i: (i, 0)),
                  pl.BlockSpec((1, C), lambda i: (0, 0)),
                  pl.BlockSpec((1, C), lambda i: (0, 0))],
        out_specs=pl.BlockSpec((tm, C), lambda i: (i, 0)),
        out_shape=jax.ShapeDtypeStruct((Mp, C), x.dtype),
        compiler_params=pltpu.CompilerParams(
            dimension_semantics=("parallel",),
            vmem_limit_bytes=_VMEM_LIMIT),
    )(xp, g.reshape(1, C).astype(jnp.float32), b.reshape(1, C).astype(jnp.float32))
    return y[:M] if Mp != M else y


# ----------------------------------------------------------------------------- fused depthwise + pointwise conv + GELU
def _make_dwpw_kernel(C):
    def kernel(x_ref, dww_ref, dwb_ref, pww_ref, pwb_ref, o_ref):
        x = x_ref[...].astype(jnp.float32)          # (tm, 3*C)  taps packed lane-wise
        w = dww_ref[...]                            # (3, C)
        dw = (x[:, 0 * C:1 * C] * w[0:1, :]
              + x[:, 1 * C:2 * C] * w[1:2, :]
              + x[:, 2 * C:3 * C] * w[2:3, :]
              + dwb_ref[...])
        y = jnp.dot(dw.astype(jnp.bfloat16), pww_ref[...],
                    preferred_element_type=jnp.float32) + pwb_ref[...]
        o_ref[...] = _gelu_tanh(y).astype(o_ref.dtype)
    return kernel


def dwpw_conv(x_taps, dw_w, dw_b, pw_w, pw_b, *, out_dtype=jnp.float32, tm=256, tn=256):
    """Depthwise k=3 tap-sum + pointwise 1x1 matmul + GELU in one kernel.
    x_taps: (M, 3*C) im2col taps (bf16), dw_w: (3, C), pw_w: (C, N)."""
    M, K3 = x_taps.shape
    C = K3 // 3
    N = pw_w.shape[1]
    tm, Mp = _row_plan(M, tm)
    tn = _tile(N, tn, 128)
    xt = _pad_rows(x_taps.astype(jnp.bfloat16), Mp)
    y = pl.pallas_call(
        _make_dwpw_kernel(C),
        grid=(Mp // tm, N // tn),
        in_specs=[
            pl.BlockSpec((tm, 3 * C), lambda i, j: (i, 0)),
            pl.BlockSpec((3, C), lambda i, j: (0, 0)),
            pl.BlockSpec((1, C), lambda i, j: (0, 0)),
            pl.BlockSpec((C, tn), lambda i, j: (0, j)),
            pl.BlockSpec((1, tn), lambda i, j: (0, j)),
        ],
        out_specs=pl.BlockSpec((tm, tn), lambda i, j: (i, j)),
        out_shape=jax.ShapeDtypeStruct((Mp, N), out_dtype),
        compiler_params=pltpu.CompilerParams(
            dimension_semantics=("parallel", "parallel"),
            vmem_limit_bytes=_VMEM_LIMIT),
    )(xt, dw_w.astype(jnp.float32), dw_b.reshape(1, C).astype(jnp.float32),
      pw_w.astype(jnp.bfloat16), pw_b.reshape(1, N).astype(jnp.float32))
    return y[:M] if Mp != M else y


# ----------------------------------------------------------------------------- flash-style rotary multi-head attention
def _make_flash_attn_kernel(head_dim):
    half = head_dim // 2
    scale = 1.0 / math.sqrt(head_dim)

    def rope(z, cos, sin):
        z1 = z[:, :half]
        z2 = z[:, half:]
        # TODO(synk): for head_dim >= 128 prefer pltpu.roll + sign mask (XLU rotate
        # hides under the MXU); half-split form used for small heads.
        return jnp.concatenate([z1 * cos - z2 * sin, z2 * cos + z1 * sin], axis=-1)

    def kernel(q_ref, k_ref, v_ref, cq_ref, sq_ref, ck_ref, sk_ref,
               o_ref, m_ref, l_ref, acc_ref):
        kv = pl.program_id(3)

        @pl.when(kv == 0)
        def _():
            m_ref[...] = jnp.full(m_ref.shape, -jnp.inf, jnp.float32)
            l_ref[...] = jnp.zeros_like(l_ref)
            acc_ref[...] = jnp.zeros_like(acc_ref)

        q = q_ref[...].astype(jnp.float32)                 # (tq, D)
        k = k_ref[...].astype(jnp.float32)                 # (tkv, D)
        qh = (rope(q, cq_ref[...], sq_ref[...]) * scale).astype(jnp.bfloat16)
        kh = rope(k, ck_ref[...], sk_ref[...]).astype(jnp.bfloat16)

        # q @ k^T without an explicit transpose.
        # TODO(synk): if the bundle dump shows a vxpose on kh, pre-transpose K instead.
        s = jax.lax.dot_general(qh, kh, (((1,), (1,)), ((), ())),
                                preferred_element_type=jnp.float32)   # (tq, tkv)

        m_prev = m_ref[...]
        m_new = jnp.maximum(m_prev, jnp.max(s, axis=-1, keepdims=True))
        alpha = jnp.exp(m_prev - m_new)
        p = jnp.exp(s - m_new)
        l_ref[...] = alpha * l_ref[...] + jnp.sum(p, axis=-1, keepdims=True)
        acc_ref[...] = alpha * acc_ref[...] + jnp.dot(
            p.astype(jnp.bfloat16), v_ref[...], preferred_element_type=jnp.float32)
        m_ref[...] = m_new

        @pl.when(kv == pl.num_programs(3) - 1)
        def _():
            # Normalize the (tq, D) accumulator, not the (tq, tkv) probabilities.
            o_ref[...] = (acc_ref[...] *
                          pl.reciprocal(l_ref[...], approx=True)).astype(o_ref.dtype)

    return kernel


def attention(qkv, cos, sin, *, batch, seq, n_head, tq=256, tkv=256):
    """Bidirectional rotary MHA, flash-style: grid (B, H, q-tiles, kv-tiles),
    online softmax, per-head lane-aligned (tile, D) blocks."""
    BT, C3 = qkv.shape
    C = C3 // 3
    D = C // n_head
    half = D // 2
    # Head-major relayout (one XLA transpose on bf16 data) so the kernel sees
    # contiguous (tile, D) blocks per (batch, head).
    qkv5 = qkv.reshape(batch, seq, 3, n_head, D).astype(jnp.bfloat16)
    q = jnp.transpose(qkv5[:, :, 0], (0, 2, 1, 3))        # (B, H, T, D)
    k = jnp.transpose(qkv5[:, :, 1], (0, 2, 1, 3))
    v = jnp.transpose(qkv5[:, :, 2], (0, 2, 1, 3))
    tq = _tile(seq, tq, 8)
    tkv = _tile(seq, tkv, 8)
    cos = cos.astype(jnp.float32)
    sin = sin.astype(jnp.float32)

    out = pl.pallas_call(
        _make_flash_attn_kernel(D),
        grid=(batch, n_head, seq // tq, seq // tkv),
        in_specs=[
            pl.BlockSpec((None, None, tq, D), lambda b, h, i, j: (b, h, i, 0)),
            pl.BlockSpec((None, None, tkv, D), lambda b, h, i, j: (b, h, j, 0)),
            pl.BlockSpec((None, None, tkv, D), lambda b, h, i, j: (b, h, j, 0)),
            pl.BlockSpec((tq, half), lambda b, h, i, j: (i, 0)),
            pl.BlockSpec((tq, half), lambda b, h, i, j: (i, 0)),
            pl.BlockSpec((tkv, half), lambda b, h, i, j: (j, 0)),
            pl.BlockSpec((tkv, half), lambda b, h, i, j: (j, 0)),
        ],
        out_specs=pl.BlockSpec((None, None, tq, D), lambda b, h, i, j: (b, h, i, 0)),
        out_shape=jax.ShapeDtypeStruct((batch, n_head, seq, D), jnp.bfloat16),
        scratch_shapes=[pltpu.VMEM((tq, 1), jnp.float32),
                        pltpu.VMEM((tq, 1), jnp.float32),
                        pltpu.VMEM((tq, D), jnp.float32)],
        compiler_params=pltpu.CompilerParams(
            dimension_semantics=("parallel", "parallel", "parallel", "arbitrary"),
            vmem_limit_bytes=_VMEM_LIMIT),
    )(q, k, v, cos, sin, cos, sin)
    # Back to lane-dense (B*T, C) for the output projection matmul.
    return jnp.transpose(out, (0, 2, 1, 3)).reshape(BT, C)


# ----------------------------------------------------------------------------- glue
def _im2col_strided(x, stride):
    """k=3, pad=1 conv taps packed lane-wise; x:(B,T,C) -> bf16 (B*T_out, 3*C), T_out."""
    B, T, C = x.shape
    xp = jnp.pad(x.astype(jnp.bfloat16), ((0, 0), (1, 1), (0, 0)))
    T_out = (T + 2 - 3) // stride + 1
    cols = [xp[:, k:k + stride * (T_out - 1) + 1:stride, :] for k in range(3)]
    patches = jnp.concatenate(cols, axis=-1).reshape(B * T_out, 3 * C)
    return patches, T_out
    # TODO(synk): for long-T conv stages, fold the 3-tap gather into the kernel with
    # a haloed BlockSpec over the un-expanded (B*T, C) input to avoid 3x HBM traffic.


def conv_stage_full(x, w, b, stride, out_dtype=jnp.float32):
    """nn.Conv1d(Cin,Cout,3,stride,pad=1) + GELU.  w: torch layout (Cout,Cin,3)."""
    B = x.shape[0]
    patches, T_out = _im2col_strided(x, stride)                     # (M, 3*Cin) bf16
    w_flat = jnp.transpose(w, (2, 1, 0)).reshape(-1, w.shape[0])    # (3*Cin, Cout)
    y = matmul_bias(patches, w_flat, b, gelu=True, out_dtype=out_dtype)
    return y.reshape(B, T_out, -1)


def conv_stage_dwsep(x, prm, stride, out_dtype=jnp.float32):
    """DWConv1d (depthwise k=3 + pointwise 1x1) + GELU, fused into one kernel."""
    B = x.shape[0]
    patches, T_out = _im2col_strided(x, stride)
    y = dwpw_conv(patches, prm["dw_w"], prm["dw_b"], prm["pw_w"], prm["pw_b"],
                  out_dtype=out_dtype)
    return y.reshape(B, T_out, -1)


def rotary_tables(T, dim, base=10000.0):
    inv_freq = 1.0 / (base ** (jnp.arange(0, dim, 2, dtype=jnp.float32) / dim))
    freqs = jnp.outer(jnp.arange(T, dtype=jnp.float32), inv_freq)   # (T, dim//2)
    return jnp.cos(freqs), jnp.sin(freqs)


def block_forward(x, prm, cos, sin, n_head):
    B, T, C = x.shape
    xf = x.reshape(B * T, C)        # residual stream kept f32 for accuracy

    # LN1 fused into the QKV projection; qkv emitted bf16 (halves attention DMA).
    qkv = ln_matmul_bias(xf, prm["ln1_g"], prm["ln1_b"], prm["attn_w"], prm["attn_b"],
                         out_dtype=jnp.bfloat16)
    o = attention(qkv, cos, sin, batch=B, seq=T, n_head=n_head)     # bf16 (B*T, C)
    xf = matmul_bias(o, prm["attn_proj_w"], prm["attn_proj_b"], residual=xf,
                     out_dtype=jnp.float32)

    # LN2 fused into the MLP up-projection (+GELU epilogue); hidden emitted bf16.
    h = ln_matmul_bias(xf, prm["ln2_g"], prm["ln2_b"], prm["fc_w"], prm["fc_b"],
                       gelu=True, out_dtype=jnp.bfloat16)
    xf = matmul_bias(h, prm["mlp_proj_w"], prm["mlp_proj_b"], residual=xf,
                     out_dtype=jnp.float32)
    return xf.reshape(B, T, C)


def subsampled_lengths(input_lengths, strides):
    o = input_lengths.astype(jnp.float32)
    for s in strides:
        o = o + 2 * 1 - 3            # p=1, k=3
        o = jnp.floor(o / s + 1)
    return o.astype(jnp.int32)


def striding_audio_encoder(params, cfg, x, input_lengths):
    """x: (B, T, d_input) float32."""
    n_dw = len(params["dwconvs"])
    x = conv_stage_full(x, params["conv0_w"], params["conv0_b"], cfg.conv_strides[0],
                        out_dtype=jnp.bfloat16 if n_dw > 0 else jnp.float32)
    for si, (prm, s) in enumerate(zip(params["dwconvs"], cfg.conv_strides[1:])):
        last = si == n_dw - 1
        x = conv_stage_dwsep(x, prm, s,
                             out_dtype=jnp.float32 if last else jnp.bfloat16)
    B, T, C = x.shape
    cos, sin = rotary_tables(T, cfg.rotary_emb_dim)
    # transformer.drop: dropout p = cfg.dropout = 0.0 -> identity
    for prm in params["blocks"]:
        x = block_forward(x, prm, cos, sin, cfg.n_head)
    x = layer_norm(x.reshape(B * T, C), params["lnf_g"], params["lnf_b"]).reshape(B, T, C)
    return x, subsampled_lengths(input_lengths, cfg.conv_strides), {}


# ----------------------------------------------------------------------------- params
def init_params(key, cfg):
    keys = iter(jax.random.split(key, 64))

    def nrm(shape, scale=0.02):
        return (scale * jax.random.normal(next(keys), shape)).astype(jnp.float32)

    p = {}
    p["conv0_w"] = nrm((cfg.d_conv, cfg.d_input, 3), 0.1)   # torch Conv1d layout (Cout,Cin,K)
    p["conv0_b"] = nrm((cfg.d_conv,), 0.1)

    n_mid = len(cfg.conv_strides) - 2
    outs = [cfg.d_conv] * n_mid + [cfg.n_embd]
    cin = cfg.d_conv
    dws = []
    for cout in outs:
        dws.append(dict(
            dw_w=nrm((3, cin), 0.1),      # depthwise (K, C)  (= torch (C,1,K) rearranged)
            dw_b=nrm((cin,), 0.1),
            pw_w=nrm((cin, cout), 0.1),   # pointwise (Cin, Cout) (= torch (Cout,Cin,1)^T)
            pw_b=nrm((cout,), 0.1),
        ))
        cin = cout
    p["dwconvs"] = dws

    C = cfg.n_embd
    blocks = []
    for _ in range(cfg.n_layer):
        blocks.append(dict(
            ln1_g=jnp.ones((C,), jnp.float32), ln1_b=jnp.zeros((C,), jnp.float32),
            attn_w=nrm((C, 3 * C)), attn_b=jnp.zeros((3 * C,), jnp.float32),
            attn_proj_w=nrm((C, C)), attn_proj_b=jnp.zeros((C,), jnp.float32),
            ln2_g=jnp.ones((C,), jnp.float32), ln2_b=jnp.zeros((C,), jnp.float32),
            fc_w=nrm((C, 4 * C)), fc_b=jnp.zeros((4 * C,), jnp.float32),
            mlp_proj_w=nrm((4 * C, C)), mlp_proj_b=jnp.zeros((C,), jnp.float32),
        ))
    p["blocks"] = blocks
    p["lnf_g"] = jnp.ones((C,), jnp.float32)
    p["lnf_b"] = jnp.zeros((C,), jnp.float32)
    return p


# ----------------------------------------------------------------------------- main
if __name__ == "__main__":
    cfg = SimpleNamespace(
        d_input=8, d_conv=16, n_embd=32, n_head=4, n_layer=2,
        rotary_emb_dim=8, conv_strides=(2, 2, 2), dropout=0.0, bias=True,
    )
    assert cfg.n_embd % cfg.n_head == 0
    assert cfg.rotary_emb_dim == cfg.n_embd // cfg.n_head

    key = jax.random.PRNGKey(0)
    pkey, xkey = jax.random.split(key)
    params = init_params(pkey, cfg)

    B, T_in = 2, 64
    x = jax.random.normal(xkey, (B, T_in, cfg.d_input), dtype=jnp.float32)
    input_lengths = jnp.array([64, 48], dtype=jnp.int32)

    fwd = jax.jit(lambda xx, ll: striding_audio_encoder(params, cfg, xx, ll))
    y, lens, _ = fwd(x, input_lengths)
    jax.block_until_ready((y, lens))

    assert y.shape == (B, T_in // 8, cfg.n_embd), y.shape
    assert lens.shape == (B,) and lens.dtype == jnp.int32
    print("KERNEL_OK")
</pallas_src>

<mosaic_0001>
module attributes {stable_mosaic.version = 11 : i64} {
  func.func @kernel(%arg0: i32, %arg1: i32, %arg2: i32, %arg3: memref<64x24xbf16, #tpu.memory_space<vmem>>, %arg4: memref<24x16xbf16, #tpu.memory_space<vmem>>, %arg5: memref<1x16xf32, #tpu.memory_space<vmem>>, %arg6: memref<64x16xbf16, #tpu.memory_space<vmem>>, %arg7: memref<64x16xf32, #tpu.memory_space<vmem>>) attributes {dimension_semantics = [#tpu.dimension_semantics<parallel>, #tpu.dimension_semantics<parallel>, #tpu.dimension_semantics<arbitrary>], iteration_bounds = array<i64: 1, 1, 1>, scalar_prefetch = 0 : i64, scratch_operands = 1 : i64, tpu.core_type = #tpu.core_type<tc>, window_params = [{transform_indices = @transform_0, window_bounds = array<i64: 64, 24>}, {transform_indices = @transform_1, window_bounds = array<i64: 24, 16>}, {transform_indices = @transform_2, window_bounds = array<i64: 1, 16>}, {transform_indices = @transform_3, window_bounds = array<i64: 64, 16>}]} {
    %c0_i32 = arith.constant 0 : i32
    %0 = arith.cmpi eq, %arg2, %c0_i32 : i32
    %1 = arith.extui %0 : i1 to i32
    %c0_i32_0 = arith.constant 0 : i32
    %2 = arith.cmpi ne, %1, %c0_i32_0 : i32
    scf.if %2 {
      %cst_10 = arith.constant 0.000000e+00 : f32
      %12 = vector.broadcast %cst_10 : f32 to vector<64x16xf32>
      %c0_11 = arith.constant 0 : index
      %c0_12 = arith.constant 0 : index
      %13 = vector.load %arg7[%c0_11, %c0_12] : memref<64x16xf32, #tpu.memory_space<vmem>>, vector<64x16xf32>
      tpu.vector_store %arg7[%c0_11, %c0_12], %12 {strides = array<i32>} : memref<64x16xf32, #tpu.memory_space<vmem>>, vector<64x16xf32>,
    } else {
    }
    %c0 = arith.constant 0 : index
    %c0_1 = arith.constant 0 : index
    %3 = vector.load %arg7[%c0, %c0_1] : memref<64x16xf32, #tpu.memory_space<vmem>>, vector<64x16xf32>
    %c0_2 = arith.constant 0 : index
    %c0_3 = arith.constant 0 : index
    %4 = vector.load %arg3[%c0_2, %c0_3] : memref<64x24xbf16, #tpu.memory_space<vmem>>, vector<64x24xbf16>
    %c0_4 = arith.constant 0 : index
    %c0_5 = arith.constant 0 : index
    %5 = vector.load %arg4[%c0_4, %c0_5] : memref<24x16xbf16, #tpu.memory_space<vmem>>, vector<24x16xbf16>
    %cst = arith.constant dense<0.000000e+00> : vector<64x16xf32>
    %6 = tpu.matmul %4, %5, %cst {dimension_numbers = #tpu.dot_dimension_numbers<[1], [0], [0], [1], [0, 0, 1, 1], [], []>} : vector<64x24xbf16>, vector<24x16xbf16>, vector<64x16xf32> -> vector<64x16xf32>
    %7 = arith.addf %3, %6 : vector<64x16xf32>
    %c0_6 = arith.constant 0 : index
    %c0_7 = arith.constant 0 : index
    %8 = vector.load %arg7[%c0_6, %c0_7] : memref<64x16xf32, #tpu.memory_space<vmem>>, vector<64x16xf32>
    tpu.vector_store %arg7[%c0_6, %c0_7], %7 {strides = array<i32>} : memref<64x16xf32, #tpu.memory_space<vmem>>, vector<64x16xf32>,
    %c0_i32_8 = arith.constant 0 : i32
    %9 = arith.cmpi eq, %arg2, %c0_i32_8 : i32
    %10 = arith.extui %9 : i1 to i32
    %c0_i32_9 = arith.constant 0 : i32
    %11 = arith.cmpi ne, %10, %c0_i32_9 : i32
    scf.if %11 {
      %c0_10 = arith.constant 0 : index
      %c0_11 = arith.constant 0 : index
      %12 = vector.load %arg7[%c0_10, %c0_11] : memref<64x16xf32, #tpu.memory_space<vmem>>, vector<64x16xf32>
      %c0_12 = arith.constant 0 : index
      %c0_13 = arith.constant 0 : index
      %13 = vector.load %arg5[%c0_12, %c0_13] : memref<1x16xf32, #tpu.memory_space<vmem>>, vector<1x16xf32>
      %14 = vector.broadcast %13 : vector<1x16xf32> to vector<64x16xf32>
      %15 = arith.addf %12, %14 : vector<64x16xf32>
      %cst_14 = arith.constant 5.000000e-01 : f32
      %16 = vector.broadcast %cst_14 : f32 to vector<64x16xf32>
      %17 = arith.mulf %16, %15 : vector<64x16xf32>
      %cst_15 = arith.constant 4.471500e-02 : f32
      %18 = vector.broadcast %cst_15 : f32 to vector<64x16xf32>
      %19 = arith.mulf %18, %15 : vector<64x16xf32>
      %20 = arith.mulf %19, %15 : vector<64x16xf32>
      %21 = arith.mulf %20, %15 : vector<64x16xf32>
      %22 = arith.addf %15, %21 : vector<64x16xf32>
      %cst_16 = arith.constant 0.797884583 : f32
      %23 = vector.broadcast %cst_16 : f32 to vector<64x16xf32>
      %24 = arith.mulf %23, %22 : vector<64x16xf32>
      %25 = math.tanh %24 : vector<64x16xf32>
      %cst_17 = arith.constant 1.000000e+00 : f32
      %26 = vector.broadcast %cst_17 : f32 to vector<64x16xf32>
      %27 = arith.addf %26, %25 : vector<64x16xf32>
      %28 = arith.mulf %17, %27 : vector<64x16xf32>
      %29 = arith.truncf %28 : vector<64x16xf32> to vector<64x16xbf16>
      %c0_18 = arith.constant 0 : index
      %c0_19 = arith.constant 0 : index
      %30 = vector.load %arg6[%c0_18, %c0_19] : memref<64x16xbf16, #tpu.memory_space<vmem>>, vector<64x16xbf16>
      tpu.vector_store %arg6[%c0_18, %c0_19], %29 {strides = array<i32>} : memref<64x16xbf16, #tpu.memory_space<vmem>>, vector<64x16xbf16>,
    } else {
    }
    return
  }
  func.func @transform_0(%arg0: i32, %arg1: i32, %arg2: i32) -> (i32, i32) {
    %c0_i32 = arith.constant 0 : i32
    return %arg0, %arg2 : i32, i32
  }
  func.func @transform_1(%arg0: i32, %arg1: i32, %arg2: i32) -> (i32, i32) {
    %c0_i32 = arith.constant 0 : i32
    return %arg2, %arg1 : i32, i32
  }
  func.func @transform_2(%arg0: i32, %arg1: i32, %arg2: i32) -> (i32, i32) {
    %c0_i32 = arith.constant 0 : i32
    %c0_i32_0 = arith.constant 0 : i32
    return %c0_i32, %arg1 : i32, i32
  }
  func.func @transform_3(%arg0: i32, %arg1: i32, %arg2: i32) -> (i32, i32) {
    %c0_i32 = arith.constant 0 : i32
    return %arg0, %arg1 : i32, i32
  }
}

module attributes {stable_mosaic.version = 11 : i64} {
  func.func @kernel(%arg0: i32, %arg1: i32, %arg2: memref<16x48xbf16, #tpu.memory_space<vmem>>, %arg3: memref<3x16xf32, #tpu.memory_space<vmem>>, %arg4: memref<1x16xf32, #tpu.memory_space<vmem>>, %arg5: memref<16x32xbf16, #tpu.memory_space<vmem>>, %arg6: memref<1x32xf32, #tpu.memory_space<vmem>>, %arg7: memref<16x32xf32, #tpu.memory_space<vmem>>) attributes {dimension_semantics = [#tpu.dimension_semantics<parallel>, #tpu.dimension_semantics<parallel>], iteration_bounds = array<i64: 1, 1>, scalar_prefetch = 0 : i64, scratch_operands = 0 : i64, tpu.core_type = #tpu.core_type<tc>, window_params = [{transform_indices = @transform_0, window_bounds = array<i64: 16, 48>}, {pipeline_mode = #tpu.pipeline_mode<synchronous>, transform_indices = @transform_1, window_bounds = array<i64: 3, 16>}, {pipeline_mode = #tpu.pipeline_mode<synchronous>, transform_indices = @transform_2, window_bounds = array<i64: 1, 16>}, {transform_indices = @transform_3, window_bounds = array<i64: 16, 32>}, {transform_indices = @transform_4, window_bounds = array<i64: 1, 32>}, {transform_indices = @transform_5, window_bounds = array<i64: 16, 32>}]} {
    %c0 = arith.constant 0 : index
    %c0_0 = arith.constant 0 : index
    %0 = vector.load %arg2[%c0, %c0_0] : memref<16x48xbf16, #tpu.memory_space<vmem>>, vector<16x48xbf16>
    %1 = arith.extf %0 : vector<16x48xbf16> to vector<16x48xf32>
    %c0_1 = arith.constant 0 : index
    %c0_2 = arith.constant 0 : index
    %2 = vector.load %arg3[%c0_1, %c0_2] : memref<3x16xf32, #tpu.memory_space<vmem>>, vector<3x16xf32>
    %3 = vector.extract_strided_slice %1 {offsets = [0, 0], sizes = [16, 16], strides = [1, 1]} : vector<16x48xf32> to vector<16x16xf32>
    %4 = vector.extract_strided_slice %2 {offsets = [0, 0], sizes = [1, 16], strides = [1, 1]} : vector<3x16xf32> to vector<1x16xf32>
    %5 = vector.broadcast %4 : vector<1x16xf32> to vector<16x16xf32>
    %6 = arith.mulf %3, %5 : vector<16x16xf32>
    %7 = vector.extract_strided_slice %1 {offsets = [0, 16], sizes = [16, 16], strides = [1, 1]} : vector<16x48xf32> to vector<16x16xf32>
    %8 = vector.extract_strided_slice %2 {offsets = [1, 0], sizes = [1, 16], strides = [1, 1]} : vector<3x16xf32> to vector<1x16xf32>
    %9 = vector.broadcast %8 : vector<1x16xf32> to vector<16x16xf32>
    %10 = arith.mulf %7, %9 : vector<16x16xf32>
    %11 = arith.addf %6, %10 : vector<16x16xf32>
    %12 = vector.extract_strided_slice %1 {offsets = [0, 32], sizes = [16, 16], strides = [1, 1]} : vector<16x48xf32> to vector<16x16xf32>
    %13 = vector.extract_strided_slice %2 {offsets = [2, 0], sizes = [1, 16], strides = [1, 1]} : vector<3x16xf32> to vector<1x16xf32>
    %14 = vector.broadcast %13 : vector<1x16xf32> to vector<16x16xf32>
    %15 = arith.mulf %12, %14 : vector<16x16xf32>
    %16 = arith.addf %11, %15 : vector<16x16xf32>
    %c0_3 = arith.constant 0 : index
    %c0_4 = arith.constant 0 : index
    %17 = vector.load %arg4[%c0_3, %c0_4] : memref<1x16xf32, #tpu.memory_space<vmem>>, vector<1x16xf32>
    %18 = vector.broadcast %17 : vector<1x16xf32> to vector<16x16xf32>
    %19 = arith.addf %16, %18 : vector<16x16xf32>
    %20 = arith.truncf %19 : vector<16x16xf32> to vector<16x16xbf16>
    %c0_5 = arith.constant 0 : index
    %c0_6 = arith.constant 0 : index
    %21 = vector.load %arg5[%c0_5, %c0_6] : memref<16x32xbf16, #tpu.memory_space<vmem>>, vector<16x32xbf16>
    %cst = arith.constant dense<0.000000e+00> : vector<16x32xf32>
    %22 = tpu.matmul %20, %21, %cst {dimension_numbers = #tpu.dot_dimension_numbers<[1], [0], [0], [1], [0, 0, 1, 1], [], []>} : vector<16x16xbf16>, vector<16x32xbf16>, vector<16x32xf32> -> vector<16x32xf32>
    %c0_7 = arith.constant 0 : index
    %c0_8 = arith.constant 0 : index
    %23 = vector.load %arg6[%c0_7, %c0_8] : memref<1x32xf32, #tpu.memory_space<vmem>>, vector<1x32xf32>
    %24 = vector.broadcast %23 : vector<1x32xf32> to vector<16x32xf32>
    %25 = arith.addf %22, %24 : vector<16x32xf32>
    %cst_9 = arith.constant 5.000000e-01 : f32
    %26 = vector.broadcast %cst_9 : f32 to vector<16x32xf32>
    %27 = arith.mulf %26, %25 : vector<16x32xf32>
    %cst_10 = arith.constant 4.471500e-02 : f32
    %28 = vector.broadcast %cst_10 : f32 to vector<16x32xf32>
    %29 = arith.mulf %28, %25 : vector<16x32xf32>
    %30 = arith.mulf %29, %25 : vector<16x32xf32>
    %31 = arith.mulf %30, %25 : vector<16x32xf32>
    %32 = arith.addf %25, %31 : vector<16x32xf32>
    %cst_11 = arith.constant 0.797884583 : f32
    %33 = vector.broadcast %cst_11 : f32 to vector<16x32xf32>
    %34 = arith.mulf %33, %32 : vector<16x32xf32>
    %35 = math.tanh %34 : vector<16x32xf32>
    %cst_12 = arith.constant 1.000000e+00 : f32
    %36 = vector.broadcast %cst_12 : f32 to vector<16x32xf32>
    %37 = arith.addf %36, %35 : vector<16x32xf32>
    %38 = arith.mulf %27, %37 : vector<16x32xf32>
    %c0_13 = arith.constant 0 : index
    %c0_14 = arith.constant 0 : index
    %39 = vector.load %arg7[%c0_13, %c0_14] : memref<16x32xf32, #tpu.memory_space<vmem>>, vector<16x32xf32>
    tpu.vector_store %arg7[%c0_13, %c0_14], %38 {strides = array<i32>} : memref<16x32xf32, #tpu.memory_space<vmem>>, vector<16x32xf32>,
    return
  }
  func.func @transform_0(%arg0: i32, %arg1: i32) -> (i32, i32) {
    %c0_i32 = arith.constant 0 : i32
    %c0_i32_0 = arith.constant 0 : i32
    return %arg0, %c0_i32 : i32, i32
  }
  func.func @transform_1(%arg0: i32, %arg1: i32) -> (i32, i32) {
    %c0_i32 = arith.constant 0 : i32
    %c0_i32_0 = arith.constant 0 : i32
    %c0_i32_1 = arith.constant 0 : i32
    return %c0_i32, %c0_i32_0 : i32, i32
  }
  func.func @transform_2(%arg0: i32, %arg1: i32) -> (i32, i32) {
    %c0_i32 = arith.constant 0 : i32
    %c0_i32_0 = arith.constant 0 : i32
    %c0_i32_1 = arith.constant 0 : i32
    return %c0_i32, %c0_i32_0 : i32, i32
  }
  func.func @transform_3(%arg0: i32, %arg1: i32) -> (i32, i32) {
    %c0_i32 = arith.constant 0 : i32
    %c0_i32_0 = arith.constant 0 : i32
    return %c0_i32, %arg1 : i32, i32
  }
  func.func @transform_4(%arg0: i32, %arg1: i32) -> (i32, i32) {
    %c0_i32 = arith.constant 0 : i32
    %c0_i32_0 = arith.constant 0 : i32
    return %c0_i32, %arg1 : i32, i32
  }
  func.func @transform_5(%arg0: i32, %arg1: i32) -> (i32, i32) {
    %c0_i32 = arith.constant 0 : i32
    return %arg0, %arg1 : i32, i32
  }
}

module attributes {stable_mosaic.version = 11 : i64} {
  func.func @kernel(%arg0: i32, %arg1: i32, %arg2: memref<32x48xbf16, #tpu.memory_space<vmem>>, %arg3: memref<3x16xf32, #tpu.memory_space<vmem>>, %arg4: memref<1x16xf32, #tpu.memory_space<vmem>>, %arg5: memref<16x16xbf16, #tpu.memory_space<vmem>>, %arg6: memref<1x16xf32, #tpu.memory_space<vmem>>, %arg7: memref<32x16xbf16, #tpu.memory_space<vmem>>) attributes {dimension_semantics = [#tpu.dimension_semantics<parallel>, #tpu.dimension_semantics<parallel>], iteration_bounds = array<i64: 1, 1>, scalar_prefetch = 0 : i64, scratch_operands = 0 : i64, tpu.core_type = #tpu.core_type<tc>, window_params = [{transform_indices = @transform_0, window_bounds = array<i64: 32, 48>}, {pipeline_mode = #tpu.pipeline_mode<synchronous>, transform_indices = @transform_1, window_bounds = array<i64: 3, 16>}, {pipeline_mode = #tpu.pipeline_mode<synchronous>, transform_indices = @transform_2, window_bounds = array<i64: 1, 16>}, {transform_indices = @transform_3, window_bounds = array<i64: 16, 16>}, {transform_indices = @transform_4, window_bounds = array<i64: 1, 16>}, {transform_indices = @transform_5, window_bounds = array<i64: 32, 16>}]} {
    %c0 = arith.constant 0 : index
    %c0_0 = arith.constant 0 : index
    %0 = vector.load %arg2[%c0, %c0_0] : memref<32x48xbf16, #tpu.memory_space<vmem>>, vector<32x48xbf16>
    %1 = arith.extf %0 : vector<32x48xbf16> to vector<32x48xf32>
    %c0_1 = arith.constant 0 : index
    %c0_2 = arith.constant 0 : index
    %2 = vector.load %arg3[%c0_1, %c0_2] : memref<3x16xf32, #tpu.memory_space<vmem>>, vector<3x16xf32>
    %3 = vector.extract_strided_slice %1 {offsets = [0, 0], sizes = [32, 16], strides = [1, 1]} : vector<32x48xf32> to vector<32x16xf32>
    %4 = vector.extract_strided_slice %2 {offsets = [0, 0], sizes = [1, 16], strides = [1, 1]} : vector<3x16xf32> to vector<1x16xf32>
    %5 = vector.broadcast %4 : vector<1x16xf32> to vector<32x16xf32>
    %6 = arith.mulf %3, %5 : vector<32x16xf32>
    %7 = vector.extract_strided_slice %1 {offsets = [0, 16], sizes = [32, 16], strides = [1, 1]} : vector<32x48xf32> to vector<32x16xf32>
    %8 = vector.extract_strided_slice %2 {offsets = [1, 0], sizes = [1, 16], strides = [1, 1]} : vector<3x16xf32> to vector<1x16xf32>
    %9 = vector.broadcast %8 : vector<1x16xf32> to vector<32x16xf32>
    %10 = arith.mulf %7, %9 : vector<32x16xf32>
    %11 = arith.addf %6, %10 : vector<32x16xf32>
    %12 = vector.extract_strided_slice %1 {offsets = [0, 32], sizes = [32, 16], strides = [1, 1]} : vector<32x48xf32> to vector<32x16xf32>
    %13 = vector.extract_strided_slice %2 {offsets = [2, 0], sizes = [1, 16], strides = [1, 1]} : vector<3x16xf32> to vector<1x16xf32>
    %14 = vector.broadcast %13 : vector<1x16xf32> to vector<32x16xf32>
    %15 = arith.mulf %12, %14 : vector<32x16xf32>
    %16 = arith.addf %11, %15 : vector<32x16xf32>
    %c0_3 = arith.constant 0 : index
    %c0_4 = arith.constant 0 : index
    %17 = vector.load %arg4[%c0_3, %c0_4] : memref<1x16xf32, #tpu.memory_space<vmem>>, vector<1x16xf32>
    %18 = vector.broadcast %17 : vector<1x16xf32> to vector<32x16xf32>
    %19 = arith.addf %16, %18 : vector<32x16xf32>
    %20 = arith.truncf %19 : vector<32x16xf32> to vector<32x16xbf16>
    %c0_5 = arith.constant 0 : index
    %c0_6 = arith.constant 0 : index
    %21 = vector.load %arg5[%c0_5, %c0_6] : memref<16x16xbf16, #tpu.memory_space<vmem>>, vector<16x16xbf16>
    %cst = arith.constant dense<0.000000e+00> : vector<32x16xf32>
    %22 = tpu.matmul %20, %21, %cst {dimension_numbers = #tpu.dot_dimension_numbers<[1], [0], [0], [1], [0, 0, 1, 1], [], []>} : vector<32x16xbf16>, vector<16x16xbf16>, vector<32x16xf32> -> vector<32x16xf32>
    %c0_7 = arith.constant 0 : index
    %c0_8 = arith.constant 0 : index
    %23 = vector.load %arg6[%c0_7, %c0_8] : memref<1x16xf32, #tpu.memory_space<vmem>>, vector<1x16xf32>
    %24 = vector.broadcast %23 : vector<1x16xf32> to vector<32x16xf32>
    %25 = arith.addf %22, %24 : vector<32x16xf32>
    %cst_9 = arith.constant 5.000000e-01 : f32
    %26 = vector.broadcast %cst_9 : f32 to vector<32x16xf32>
    %27 = arith.mulf %26, %25 : vector<32x16xf32>
    %cst_10 = arith.constant 4.471500e-02 : f32
    %28 = vector.broadcast %cst_10 : f32 to vector<32x16xf32>
    %29 = arith.mulf %28, %25 : vector<32x16xf32>
    %30 = arith.mulf %29, %25 : vector<32x16xf32>
    %31 = arith.mulf %30, %25 : vector<32x16xf32>
    %32 = arith.addf %25, %31 : vector<32x16xf32>
    %cst_11 = arith.constant 0.797884583 : f32
    %33 = vector.broadcast %cst_11 : f32 to vector<32x16xf32>
    %34 = arith.mulf %33, %32 : vector<32x16xf32>
    %35 = math.tanh %34 : vector<32x16xf32>
    %cst_12 = arith.constant 1.000000e+00 : f32
    %36 = vector.broadcast %cst_12 : f32 to vector<32x16xf32>
    %37 = arith.addf %36, %35 : vector<32x16xf32>
    %38 = arith.mulf %27, %37 : vector<32x16xf32>
    %39 = arith.truncf %38 : vector<32x16xf32> to vector<32x16xbf16>
    %c0_13 = arith.constant 0 : index
    %c0_14 = arith.constant 0 : index
    %40 = vector.load %arg7[%c0_13, %c0_14] : memref<32x16xbf16, #tpu.memory_space<vmem>>, vector<32x16xbf16>
    tpu.vector_store %arg7[%c0_13, %c0_14], %39 {strides = array<i32>} : memref<32x16xbf16, #tpu.memory_space<vmem>>, vector<32x16xbf16>,
    return
  }
  func.func @transform_0(%arg0: i32, %arg1: i32) -> (i32, i32) {
    %c0_i32 = arith.constant 0 : i32
    %c0_i32_0 = arith.constant 0 : i32
    return %arg0, %c0_i32 : i32, i32
  }
  func.func @transform_1(%arg0: i32, %arg1: i32) -> (i32, i32) {
    %c0_i32 = arith.constant 0 : i32
    %c0_i32_0 = arith.constant 0 : i32
    %c0_i32_1 = arith.constant 0 : i32
    return %c0_i32, %c0_i32_0 : i32, i32
  }
  func.func @transform_2(%arg0: i32, %arg1: i32) -> (i32, i32) {
    %c0_i32 = arith.constant 0 : i32
    %c0_i32_0 = arith.constant 0 : i32
    %c0_i32_1 = arith.constant 0 : i32
    return %c0_i32, %c0_i32_0 : i32, i32
  }
  func.func @transform_3(%arg0: i32, %arg1: i32) -> (i32, i32) {
    %c0_i32 = arith.constant 0 : i32
    %c0_i32_0 = arith.constant 0 : i32
    return %c0_i32, %arg1 : i32, i32
  }
  func.func @transform_4(%arg0: i32, %arg1: i32) -> (i32, i32) {
    %c0_i32 = arith.constant 0 : i32
    %c0_i32_0 = arith.constant 0 : i32
    return %c0_i32, %arg1 : i32, i32
  }
  func.func @transform_5(%arg0: i32, %arg1: i32) -> (i32, i32) {
    %c0_i32 = arith.constant 0 : i32
    return %arg0, %arg1 : i32, i32
  }
}

module attributes {stable_mosaic.version = 11 : i64} {
  func.func @kernel(%arg0: i32, %arg1: i32, %arg2: memref<16x32xf32, #tpu.memory_space<vmem>>, %arg3: memref<1x32xf32, #tpu.memory_space<vmem>>, %arg4: memref<1x32xf32, #tpu.memory_space<vmem>>, %arg5: memref<32x96xbf16, #tpu.memory_space<vmem>>, %arg6: memref<1x96xf32, #tpu.memory_space<vmem>>, %arg7: memref<16x96xbf16, #tpu.memory_space<vmem>>, %arg8: memref<16x32xbf16, #tpu.memory_space<vmem>>) attributes {dimension_semantics = [#tpu.dimension_semantics<parallel>, #tpu.dimension_semantics<arbitrary>], iteration_bounds = array<i64: 1, 1>, scalar_prefetch = 0 : i64, scratch_operands = 1 : i64, tpu.core_type = #tpu.core_type<tc>, window_params = [{transform_indices = @transform_0, window_bounds = array<i64: 16, 32>}, {pipeline_mode = #tpu.pipeline_mode<synchronous>, transform_indices = @transform_1, window_bounds = array<i64: 1, 32>}, {pipeline_mode = #tpu.pipeline_mode<synchronous>, transform_indices = @transform_2, window_bounds = array<i64: 1, 32>}, {transform_indices = @transform_3, window_bounds = array<i64: 32, 96>}, {transform_indices = @transform_4, window_bounds = array<i64: 1, 96>}, {transform_indices = @transform_5, window_bounds = array<i64: 16, 96>}]} {
    %c0_i32 = arith.constant 0 : i32
    %0 = arith.cmpi eq, %arg1, %c0_i32 : i32
    %1 = arith.extui %0 : i1 to i32
    %c0_i32_0 = arith.constant 0 : i32
    %2 = arith.cmpi ne, %1, %c0_i32_0 : i32
    scf.if %2 {
      %c0_8 = arith.constant 0 : index
      %c0_9 = arith.constant 0 : index
      %11 = vector.load %arg2[%c0_8, %c0_9] : memref<16x32xf32, #tpu.memory_space<vmem>>, vector<16x32xf32>
      %cst_10 = arith.constant dense<0.000000e+00> : vector<16xf32>
      %12 = vector.multi_reduction <add>, %11, %cst_10 [1] : vector<16x32xf32> to vector<16xf32>
      %13 = vector.shape_cast %12 : vector<16xf32> to vector<16x1xf32>
      %cst_11 = arith.constant 3.200000e+01 : f32
      %14 = vector.broadcast %cst_11 : f32 to vector<16x1xf32>
      %15 = arith.divf %13, %14 : vector<16x1xf32>
      %16 = vector.broadcast %15 : vector<16x1xf32> to vector<16x32xf32>
      %17 = arith.subf %11, %16 : vector<16x32xf32>
      %18 = arith.mulf %17, %17 : vector<16x32xf32>
      %cst_12 = arith.constant dense<0.000000e+00> : vector<16xf32>
      %19 = vector.multi_reduction <add>, %18, %cst_12 [1] : vector<16x32xf32> to vector<16xf32>
      %20 = vector.shape_cast %19 : vector<16xf32> to vector<16x1xf32>
      %cst_13 = arith.constant 3.200000e+01 : f32
      %21 = vector.broadcast %cst_13 : f32 to vector<16x1xf32>
      %22 = arith.divf %20, %21 : vector<16x1xf32>
      %cst_14 = arith.constant 9.99999974E-6 : f32
      %23 = vector.broadcast %cst_14 : f32 to vector<16x1xf32>
      %24 = arith.addf %22, %23 : vector<16x1xf32>
      %25 = math.rsqrt %24 : vector<16x1xf32>
      %26 = vector.broadcast %25 : vector<16x1xf32> to vector<16x32xf32>
      %27 = arith.mulf %17, %26 : vector<16x32xf32>
      %c0_15 = arith.constant 0 : index
      %c0_16 = arith.constant 0 : index
      %28 = vector.load %arg3[%c0_15, %c0_16] : memref<1x32xf32, #tpu.memory_space<vmem>>, vector<1x32xf32>
      %29 = vector.broadcast %28 : vector<1x32xf32> to vector<16x32xf32>
      %30 = arith.mulf %27, %29 : vector<16x32xf32>
      %c0_17 = arith.constant 0 : index
      %c0_18 = arith.constant 0 : index
      %31 = vector.load %arg4[%c0_17, %c0_18] : memref<1x32xf32, #tpu.memory_space<vmem>>, vector<1x32xf32>
      %32 = vector.broadcast %31 : vector<1x32xf32> to vector<16x32xf32>
      %33 = arith.addf %30, %32 : vector<16x32xf32>
      %34 = arith.truncf %33 : vector<16x32xf32> to vector<16x32xbf16>
      %c0_19 = arith.constant 0 : index
      %c0_20 = arith.constant 0 : index
      %35 = vector.load %arg8[%c0_19, %c0_20] : memref<16x32xbf16, #tpu.memory_space<vmem>>, vector<16x32xbf16>
      tpu.vector_store %arg8[%c0_19, %c0_20], %34 {strides = array<i32>} : memref<16x32xbf16, #tpu.memory_space<vmem>>, vector<16x32xbf16>,
    } else {
    }
    %c0 = arith.constant 0 : index
    %c0_1 = arith.constant 0 : index
    %3 = vector.load %arg8[%c0, %c0_1] : memref<16x32xbf16, #tpu.memory_space<vmem>>, vector<16x32xbf16>
    %c0_2 = arith.constant 0 : index
    %c0_3 = arith.constant 0 : index
    %4 = vector.load %arg5[%c0_2, %c0_3] : memref<32x96xbf16, #tpu.memory_space<vmem>>, vector<32x96xbf16>
    %cst = arith.constant dense<0.000000e+00> : vector<16x96xf32>
    %5 = tpu.matmul %3, %4, %cst {dimension_numbers = #tpu.dot_dimension_numbers<[1], [0], [0], [1], [0, 0, 1, 1], [], []>} : vector<16x32xbf16>, vector<32x96xbf16>, vector<16x96xf32> -> vector<16x96xf32>
    %c0_4 = arith.constant 0 : index
    %c0_5 = arith.constant 0 : index
    %6 = vector.load %arg6[%c0_4, %c0_5] : memref<1x96xf32, #tpu.memory_space<vmem>>, vector<1x96xf32>
    %7 = vector.broadcast %6 : vector<1x96xf32> to vector<16x96xf32>
    %8 = arith.addf %5, %7 : vector<16x96xf32>
    %9 = arith.truncf %8 : vector<16x96xf32> to vector<16x96xbf16>
    %c0_6 = arith.constant 0 : index
    %c0_7 = arith.constant 0 : index
    %10 = vector.load %arg7[%c0_6, %c0_7] : memref<16x96xbf16, #tpu.memory_space<vmem>>, vector<16x96xbf16>
    tpu.vector_store %arg7[%c0_6, %c0_7], %9 {strides = array<i32>} : memref<16x96xbf16, #tpu.memory_space<vmem>>, vector<16x96xbf16>,
    return
  }
  func.func @transform_0(%arg0: i32, %arg1: i32) -> (i32, i32) {
    %c0_i32 = arith.constant 0 : i32
    %c0_i32_0 = arith.constant 0 : i32
    return %arg0, %c0_i32 : i32, i32
  }
  func.func @transform_1(%arg0: i32, %arg1: i32) -> (i32, i32) {
    %c0_i32 = arith.constant 0 : i32
    %c0_i32_0 = arith.constant 0 : i32
    %c0_i32_1 = arith.constant 0 : i32
    return %c0_i32, %c0_i32_0 : i32, i32
  }
  func.func @transform_2(%arg0: i32, %arg1: i32) -> (i32, i32) {
    %c0_i32 = arith.constant 0 : i32
    %c0_i32_0 = arith.constant 0 : i32
    %c0_i32_1 = arith.constant 0 : i32
    return %c0_i32, %c0_i32_0 : i32, i32
  }
  func.func @transform_3(%arg0: i32, %arg1: i32) -> (i32, i32) {
    %c0_i32 = arith.constant 0 : i32
    %c0_i32_0 = arith.constant 0 : i32
    return %c0_i32, %arg1 : i32, i32
  }
  func.func @transform_4(%arg0: i32, %arg1: i32) -> (i32, i32) {
    %c0_i32 = arith.constant 0 : i32
    %c0_i32_0 = arith.constant 0 : i32
    return %c0_i32, %arg1 : i32, i32
  }
  func.func @transform_5(%arg0: i32, %arg1: i32) -> (i32, i32) {
    %c0_i32 = arith.constant 0 : i32
    return %arg0, %arg1 : i32, i32
  }
}

module attributes {stable_mosaic.version = 11 : i64} {
  func.func @kernel(%arg0: i32, %arg1: i32, %arg2: i32, %arg3: memref<16x32xbf16, #tpu.memory_space<vmem>>, %arg4: memref<32x32xbf16, #tpu.memory_space<vmem>>, %arg5: memref<1x32xf32, #tpu.memory_space<vmem>>, %arg6: memref<16x32xf32, #tpu.memory_space<vmem>>, %arg7: memref<16x32xf32, #tpu.memory_space<vmem>>, %arg8: memref<16x32xf32, #tpu.memory_space<vmem>>) attributes {dimension_semantics = [#tpu.dimension_semantics<parallel>, #tpu.dimension_semantics<parallel>, #tpu.dimension_semantics<arbitrary>], iteration_bounds = array<i64: 1, 1, 1>, scalar_prefetch = 0 : i64, scratch_operands = 1 : i64, tpu.core_type = #tpu.core_type<tc>, window_params = [{transform_indices = @transform_0, window_bounds = array<i64: 16, 32>}, {transform_indices = @transform_1, window_bounds = array<i64: 32, 32>}, {transform_indices = @transform_2, window_bounds = array<i64: 1, 32>}, {transform_indices = @transform_3, window_bounds = array<i64: 16, 32>}, {transform_indices = @transform_4, window_bounds = array<i64: 16, 32>}]} {
    %c0_i32 = arith.constant 0 : i32
    %0 = arith.cmpi eq, %arg2, %c0_i32 : i32
    %1 = arith.extui %0 : i1 to i32
    %c0_i32_0 = arith.constant 0 : i32
    %2 = arith.cmpi ne, %1, %c0_i32_0 : i32
    scf.if %2 {
      %cst_10 = arith.constant 0.000000e+00 : f32
      %12 = vector.broadcast %cst_10 : f32 to vector<16x32xf32>
      %c0_11 = arith.constant 0 : index
      %c0_12 = arith.constant 0 : index
      %13 = vector.load %arg8[%c0_11, %c0_12] : memref<16x32xf32, #tpu.memory_space<vmem>>, vector<16x32xf32>
      tpu.vector_store %arg8[%c0_11, %c0_12], %12 {strides = array<i32>} : memref<16x32xf32, #tpu.memory_space<vmem>>, vector<16x32xf32>,
    } else {
    }
    %c0 = arith.constant 0 : index
    %c0_1 = arith.constant 0 : index
    %3 = vector.load %arg8[%c0, %c0_1] : memref<16x32xf32, #tpu.memory_space<vmem>>, vector<16x32xf32>
    %c0_2 = arith.constant 0 : index
    %c0_3 = arith.constant 0 : index
    %4 = vector.load %arg3[%c0_2, %c0_3] : memref<16x32xbf16, #tpu.memory_space<vmem>>, vector<16x32xbf16>
    %c0_4 = arith.constant 0 : index
    %c0_5 = arith.constant 0 : index
    %5 = vector.load %arg4[%c0_4, %c0_5] : memref<32x32xbf16, #tpu.memory_space<vmem>>, vector<32x32xbf16>
    %cst = arith.constant dense<0.000000e+00> : vector<16x32xf32>
    %6 = tpu.matmul %4, %5, %cst {dimension_numbers = #tpu.dot_dimension_numbers<[1], [0], [0], [1], [0, 0, 1, 1], [], []>} : vector<16x32xbf16>, vector<32x32xbf16>, vector<16x32xf32> -> vector<16x32xf32>
    %7 = arith.addf %3, %6 : vector<16x32xf32>
    %c0_6 = arith.constant 0 : index
    %c0_7 = arith.constant 0 : index
    %8 = vector.load %arg8[%c0_6, %c0_7] : memref<16x32xf32, #tpu.memory_space<vmem>>, vector<16x32xf32>
    tpu.vector_store %arg8[%c0_6, %c0_7], %7 {strides = array<i32>} : memref<16x32xf32, #tpu.memory_space<vmem>>, vector<16x32xf32>,
    %c0_i32_8 = arith.constant 0 : i32
    %9 = arith.cmpi eq, %arg2, %c0_i32_8 : i32
    %10 = arith.extui %9 : i1 to i32
    %c0_i32_9 = arith.constant 0 : i32
    %11 = arith.cmpi ne, %10, %c0_i32_9 : i32
    scf.if %11 {
      %c0_10 = arith.constant 0 : index
      %c0_11 = arith.constant 0 : index
      %12 = vector.load %arg8[%c0_10, %c0_11] : memref<16x32xf32, #tpu.memory_space<vmem>>, vector<16x32xf32>
      %c0_12 = arith.constant 0 : index
      %c0_13 = arith.constant 0 : index
      %13 = vector.load %arg5[%c0_12, %c0_13] : memref<1x32xf32, #tpu.memory_space<vmem>>, vector<1x32xf32>
      %14 = vector.broadcast %13 : vector<1x32xf32> to vector<16x32xf32>
      %15 = arith.addf %12, %14 : vector<16x32xf32>
      %c0_14 = arith.constant 0 : index
      %c0_15 = arith.constant 0 : index
      %16 = vector.load %arg6[%c0_14, %c0_15] : memref<16x32xf32, #tpu.memory_space<vmem>>, vector<16x32xf32>
      %17 = arith.addf %15, %16 : vector<16x32xf32>
      %c0_16 = arith.constant 0 : index
      %c0_17 = arith.constant 0 : index
      %18 = vector.load %arg7[%c0_16, %c0_17] : memref<16x32xf32, #tpu.memory_space<vmem>>, vector<16x32xf32>
      tpu.vector_store %arg7[%c0_16, %c0_17], %17 {strides = array<i32>} : memref<16x32xf32, #tpu.memory_space<vmem>>, vector<16x32xf32>,
    } else {
    }
    return
  }
  func.func @transform_0(%arg0: i32, %arg1: i32, %arg2: i32) -> (i32, i32) {
    %c0_i32 = arith.constant 0 : i32
    return %arg0, %arg2 : i32, i32
  }
  func.func @transform_1(%arg0: i32, %arg1: i32, %arg2: i32) -> (i32, i32) {
    %c0_i32 = arith.constant 0 : i32
    return %arg2, %arg1 : i32, i32
  }
  func.func @transform_2(%arg0: i32, %arg1: i32, %arg2: i32) -> (i32, i32) {
    %c0_i32 = arith.constant 0 : i32
    %c0_i32_0 = arith.constant 0 : i32
    return %c0_i32, %arg1 : i32, i32
  }
  func.func @transform_3(%arg0: i32, %arg1: i32, %arg2: i32) -> (i32, i32) {
    %c0_i32 = arith.constant 0 : i32
    return %arg0, %arg1 : i32, i32
  }
  func.func @transform_4(%arg0: i32, %arg1: i32, %arg2: i32) -> (i32, i32) {
    %c0_i32 = arith.constant 0 : i32
    return %arg0, %arg1 : i32, i32
  }
}

module attributes {stable_mosaic.version = 11 : i64} {
  func.func @kernel(%arg0: i32, %arg1: i32, %arg2: i32, %arg3: memref<16x128xbf16, #tpu.memory_space<vmem>>, %arg4: memref<128x32xbf16, #tpu.memory_space<vmem>>, %arg5: memref<1x32xf32, #tpu.memory_space<vmem>>, %arg6: memref<16x32xf32, #tpu.memory_space<vmem>>, %arg7: memref<16x32xf32, #tpu.memory_space<vmem>>, %arg8: memref<16x32xf32, #tpu.memory_space<vmem>>) attributes {dimension_semantics = [#tpu.dimension_semantics<parallel>, #tpu.dimension_semantics<parallel>, #tpu.dimension_semantics<arbitrary>], iteration_bounds = array<i64: 1, 1, 1>, scalar_prefetch = 0 : i64, scratch_operands = 1 : i64, tpu.core_type = #tpu.core_type<tc>, window_params = [{transform_indices = @transform_0, window_bounds = array<i64: 16, 128>}, {transform_indices = @transform_1, window_bounds = array<i64: 128, 32>}, {transform_indices = @transform_2, window_bounds = array<i64: 1, 32>}, {transform_indices = @transform_3, window_bounds = array<i64: 16, 32>}, {transform_indices = @transform_4, window_bounds = array<i64: 16, 32>}]} {
    %c0_i32 = arith.constant 0 : i32
    %0 = arith.cmpi eq, %arg2, %c0_i32 : i32
    %1 = arith.extui %0 : i1 to i32
    %c0_i32_0 = arith.constant 0 : i32
    %2 = arith.cmpi ne, %1, %c0_i32_0 : i32
    scf.if %2 {
      %cst_10 = arith.constant 0.000000e+00 : f32
      %12 = vector.broadcast %cst_10 : f32 to vector<16x32xf32>
      %c0_11 = arith.constant 0 : index
      %c0_12 = arith.constant 0 : index
      %13 = vector.load %arg8[%c0_11, %c0_12] : memref<16x32xf32, #tpu.memory_space<vmem>>, vector<16x32xf32>
      tpu.vector_store %arg8[%c0_11, %c0_12], %12 {strides = array<i32>} : memref<16x32xf32, #tpu.memory_space<vmem>>, vector<16x32xf32>,
    } else {
    }
    %c0 = arith.constant 0 : index
    %c0_1 = arith.constant 0 : index
    %3 = vector.load %arg8[%c0, %c0_1] : memref<16x32xf32, #tpu.memory_space<vmem>>, vector<16x32xf32>
    %c0_2 = arith.constant 0 : index
    %c0_3 = arith.constant 0 : index
    %4 = vector.load %arg3[%c0_2, %c0_3] : memref<16x128xbf16, #tpu.memory_space<vmem>>, vector<16x128xbf16>
    %c0_4 = arith.constant 0 : index
    %c0_5 = arith.constant 0 : index
    %5 = vector.load %arg4[%c0_4, %c0_5] : memref<128x32xbf16, #tpu.memory_space<vmem>>, vector<128x32xbf16>
    %cst = arith.constant dense<0.000000e+00> : vector<16x32xf32>
    %6 = tpu.matmul %4, %5, %cst {dimension_numbers = #tpu.dot_dimension_numbers<[1], [0], [0], [1], [0, 0, 1, 1], [], []>} : vector<16x128xbf16>, vector<128x32xbf16>, vector<16x32xf32> -> vector<16x32xf32>
    %7 = arith.addf %3, %6 : vector<16x32xf32>
    %c0_6 = arith.constant 0 : index
    %c0_7 = arith.constant 0 : index
    %8 = vector.load %arg8[%c0_6, %c0_7] : memref<16x32xf32, #tpu.memory_space<vmem>>, vector<16x32xf32>
    tpu.vector_store %arg8[%c0_6, %c0_7], %7 {strides = array<i32>} : memref<16x32xf32, #tpu.memory_space<vmem>>, vector<16x32xf32>,
    %c0_i32_8 = arith.constant 0 : i32
    %9 = arith.cmpi eq, %arg2, %c0_i32_8 : i32
    %10 = arith.extui %9 : i1 to i32
    %c0_i32_9 = arith.constant 0 : i32
    %11 = arith.cmpi ne, %10, %c0_i32_9 : i32
    scf.if %11 {
      %c0_10 = arith.constant 0 : index
      %c0_11 = arith.constant 0 : index
      %12 = vector.load %arg8[%c0_10, %c0_11] : memref<16x32xf32, #tpu.memory_space<vmem>>, vector<16x32xf32>
      %c0_12 = arith.constant 0 : index
      %c0_13 = arith.constant 0 : index
      %13 = vector.load %arg5[%c0_12, %c0_13] : memref<1x32xf32, #tpu.memory_space<vmem>>, vector<1x32xf32>
      %14 = vector.broadcast %13 : vector<1x32xf32> to vector<16x32xf32>
      %15 = arith.addf %12, %14 : vector<16x32xf32>
      %c0_14 = arith.constant 0 : index
      %c0_15 = arith.constant 0 : index
      %16 = vector.load %arg6[%c0_14, %c0_15] : memref<16x32xf32, #tpu.memory_space<vmem>>, vector<16x32xf32>
      %17 = arith.addf %15, %16 : vector<16x32xf32>
      %c0_16 = arith.constant 0 : index
      %c0_17 = arith.constant 0 : index
      %18 = vector.load %arg7[%c0_16, %c0_17] : memref<16x32xf32, #tpu.memory_space<vmem>>, vector<16x32xf32>
      tpu.vector_store %arg7[%c0_16, %c0_17], %17 {strides = array<i32>} : memref<16x32xf32, #tpu.memory_space<vmem>>, vector<16x32xf32>,
    } else {
    }
    return
  }
  func.func @transform_0(%arg0: i32, %arg1: i32, %arg2: i32) -> (i32, i32) {
    %c0_i32 = arith.constant 0 : i32
    return %arg0, %arg2 : i32, i32
  }
  func.func @transform_1(%arg0: i32, %arg1: i32, %arg2: i32) -> (i32, i32) {
    %c0_i32 = arith.constant 0 : i32
    return %arg2, %arg1 : i32, i32
  }
  func.func @transform_2(%arg0: i32, %arg1: i32, %arg2: i32) -> (i32, i32) {
    %c0_i32 = arith.constant 0 : i32
    %c0_i32_0 = arith.constant 0 : i32
    return %c0_i32, %arg1 : i32, i32
  }
  func.func @transform_3(%arg0: i32, %arg1: i32, %arg2: i32) -> (i32, i32) {
    %c0_i32 = arith.constant 0 : i32
    return %arg0, %arg1 : i32, i32
  }
  func.func @transform_4(%arg0: i32, %arg1: i32, %arg2: i32) -> (i32, i32) {
    %c0_i32 = arith.constant 0 : i32
    return %arg0, %arg1 : i32, i32
  }
}

module attributes {stable_mosaic.version = 11 : i64} {
  func.func @kernel(%arg0: i32, %arg1: i32, %arg2: memref<16x32xf32, #tpu.memory_space<vmem>>, %arg3: memref<1x32xf32, #tpu.memory_space<vmem>>, %arg4: memref<1x32xf32, #tpu.memory_space<vmem>>, %arg5: memref<32x128xbf16, #tpu.memory_space<vmem>>, %arg6: memref<1x128xf32, #tpu.memory_space<vmem>>, %arg7: memref<16x128xbf16, #tpu.memory_space<vmem>>, %arg8: memref<16x32xbf16, #tpu.memory_space<vmem>>) attributes {dimension_semantics = [#tpu.dimension_semantics<parallel>, #tpu.dimension_semantics<arbitrary>], iteration_bounds = array<i64: 1, 1>, scalar_prefetch = 0 : i64, scratch_operands = 1 : i64, tpu.core_type = #tpu.core_type<tc>, window_params = [{transform_indices = @transform_0, window_bounds = array<i64: 16, 32>}, {pipeline_mode = #tpu.pipeline_mode<synchronous>, transform_indices = @transform_1, window_bounds = array<i64: 1, 32>}, {pipeline_mode = #tpu.pipeline_mode<synchronous>, transform_indices = @transform_2, window_bounds = array<i64: 1, 32>}, {transform_indices = @transform_3, window_bounds = array<i64: 32, 128>}, {transform_indices = @transform_4, window_bounds = array<i64: 1, 128>}, {transform_indices = @transform_5, window_bounds = array<i64: 16, 128>}]} {
    %c0_i32 = arith.constant 0 : i32
    %0 = arith.cmpi eq, %arg1, %c0_i32 : i32
    %1 = arith.extui %0 : i1 to i32
    %c0_i32_0 = arith.constant 0 : i32
    %2 = arith.cmpi ne, %1, %c0_i32_0 : i32
    scf.if %2 {
      %c0_12 = arith.constant 0 : index
      %c0_13 = arith.constant 0 : index
      %24 = vector.load %arg2[%c0_12, %c0_13] : memref<16x32xf32, #tpu.memory_space<vmem>>, vector<16x32xf32>
      %cst_14 = arith.constant dense<0.000000e+00> : vector<16xf32>
      %25 = vector.multi_reduction <add>, %24, %cst_14 [1] : vector<16x32xf32> to vector<16xf32>
      %26 = vector.shape_cast %25 : vector<16xf32> to vector<16x1xf32>
      %cst_15 = arith.constant 3.200000e+01 : f32
      %27 = vector.broadcast %cst_15 : f32 to vector<16x1xf32>
      %28 = arith.divf %26, %27 : vector<16x1xf32>
      %29 = vector.broadcast %28 : vector<16x1xf32> to vector<16x32xf32>
      %30 = arith.subf %24, %29 : vector<16x32xf32>
      %31 = arith.mulf %30, %30 : vector<16x32xf32>
      %cst_16 = arith.constant dense<0.000000e+00> : vector<16xf32>
      %32 = vector.multi_reduction <add>, %31, %cst_16 [1] : vector<16x32xf32> to vector<16xf32>
      %33 = vector.shape_cast %32 : vector<16xf32> to vector<16x1xf32>
      %cst_17 = arith.constant 3.200000e+01 : f32
      %34 = vector.broadcast %cst_17 : f32 to vector<16x1xf32>
      %35 = arith.divf %33, %34 : vector<16x1xf32>
      %cst_18 = arith.constant 9.99999974E-6 : f32
      %36 = vector.broadcast %cst_18 : f32 to vector<16x1xf32>
      %37 = arith.addf %35, %36 : vector<16x1xf32>
      %38 = math.rsqrt %37 : vector<16x1xf32>
      %39 = vector.broadcast %38 : vector<16x1xf32> to vector<16x32xf32>
      %40 = arith.mulf %30, %39 : vector<16x32xf32>
      %c0_19 = arith.constant 0 : index
      %c0_20 = arith.constant 0 : index
      %41 = vector.load %arg3[%c0_19, %c0_20] : memref<1x32xf32, #tpu.memory_space<vmem>>, vector<1x32xf32>
      %42 = vector.broadcast %41 : vector<1x32xf32> to vector<16x32xf32>
      %43 = arith.mulf %40, %42 : vector<16x32xf32>
      %c0_21 = arith.constant 0 : index
      %c0_22 = arith.constant 0 : index
      %44 = vector.load %arg4[%c0_21, %c0_22] : memref<1x32xf32, #tpu.memory_space<vmem>>, vector<1x32xf32>
      %45 = vector.broadcast %44 : vector<1x32xf32> to vector<16x32xf32>
      %46 = arith.addf %43, %45 : vector<16x32xf32>
      %47 = arith.truncf %46 : vector<16x32xf32> to vector<16x32xbf16>
      %c0_23 = arith.constant 0 : index
      %c0_24 = arith.constant 0 : index
      %48 = vector.load %arg8[%c0_23, %c0_24] : memref<16x32xbf16, #tpu.memory_space<vmem>>, vector<16x32xbf16>
      tpu.vector_store %arg8[%c0_23, %c0_24], %47 {strides = array<i32>} : memref<16x32xbf16, #tpu.memory_space<vmem>>, vector<16x32xbf16>,
    } else {
    }
    %c0 = arith.constant 0 : index
    %c0_1 = arith.constant 0 : index
    %3 = vector.load %arg8[%c0, %c0_1] : memref<16x32xbf16, #tpu.memory_space<vmem>>, vector<16x32xbf16>
    %c0_2 = arith.constant 0 : index
    %c0_3 = arith.constant 0 : index
    %4 = vector.load %arg5[%c0_2, %c0_3] : memref<32x128xbf16, #tpu.memory_space<vmem>>, vector<32x128xbf16>
    %cst = arith.constant dense<0.000000e+00> : vector<16x128xf32>
    %5 = tpu.matmul %3, %4, %cst {dimension_numbers = #tpu.dot_dimension_numbers<[1], [0], [0], [1], [0, 0, 1, 1], [], []>} : vector<16x32xbf16>, vector<32x128xbf16>, vector<16x128xf32> -> vector<16x128xf32>
    %c0_4 = arith.constant 0 : index
    %c0_5 = arith.constant 0 : index
    %6 = vector.load %arg6[%c0_4, %c0_5] : memref<1x128xf32, #tpu.memory_space<vmem>>, vector<1x128xf32>
    %7 = vector.broadcast %6 : vector<1x128xf32> to vector<16x128xf32>
    %8 = arith.addf %5, %7 : vector<16x128xf32>
    %cst_6 = arith.constant 5.000000e-01 : f32
    %9 = vector.broadcast %cst_6 : f32 to vector<16x128xf32>
    %10 = arith.mulf %9, %8 : vector<16x128xf32>
    %cst_7 = arith.constant 4.471500e-02 : f32
    %11 = vector.broadcast %cst_7 : f32 to vector<16x128xf32>
    %12 = arith.mulf %11, %8 : vector<16x128xf32>
    %13 = arith.mulf %12, %8 : vector<16x128xf32>
    %14 = arith.mulf %13, %8 : vector<16x128xf32>
    %15 = arith.addf %8, %14 : vector<16x128xf32>
    %cst_8 = arith.constant 0.797884583 : f32
    %16 = vector.broadcast %cst_8 : f32 to vector<16x128xf32>
    %17 = arith.mulf %16, %15 : vector<16x128xf32>
    %18 = math.tanh %17 : vector<16x128xf32>
    %cst_9 = arith.constant 1.000000e+00 : f32
    %19 = vector.broadcast %cst_9 : f32 to vector<16x128xf32>
    %20 = arith.addf %19, %18 : vector<16x128xf32>
    %21 = arith.mulf %10, %20 : vector<16x128xf32>
    %22 = arith.truncf %21 : vector<16x128xf32> to vector<16x128xbf16>
    %c0_10 = arith.constant 0 : index
    %c0_11 = arith.constant 0 : index
    %23 = vector.load %arg7[%c0_10, %c0_11] : memref<16x128xbf16, #tpu.memory_space<vmem>>, vector<16x128xbf16>
    tpu.vector_store %arg7[%c0_10, %c0_11], %22 {strides = array<i32>} : memref<16x128xbf16, #tpu.memory_space<vmem>>, vector<16x128xbf16>,
    return
  }
  func.func @transform_0(%arg0: i32, %arg1: i32) -> (i32, i32) {
    %c0_i32 = arith.constant 0 : i32
    %c0_i32_0 = arith.constant 0 : i32
    return %arg0, %c0_i32 : i32, i32
  }
  func.func @transform_1(%arg0: i32, %arg1: i32) -> (i32, i32) {
    %c0_i32 = arith.constant 0 : i32
    %c0_i32_0 = arith.constant 0 : i32
    %c0_i32_1 = arith.constant 0 : i32
    return %c0_i32, %c0_i32_0 : i32, i32
  }
  func.func @transform_2(%arg0: i32, %arg1: i32) -> (i32, i32) {
    %c0_i32 = arith.constant 0 : i32
    %c0_i32_0 = arith.constant 0 : i32
    %c0_i32_1 = arith.constant 0 : i32
    return %c0_i32, %c0_i32_0 : i32, i32
  }
  func.func @transform_3(%arg0: i32, %arg1: i32) -> (i32, i32) {
    %c0_i32 = arith.constant 0 : i32
    %c0_i32_0 = arith.constant 0 : i32
    return %c0_i32, %arg1 : i32, i32
  }
  func.func @transform_4(%arg0: i32, %arg1: i32) -> (i32, i32) {
    %c0_i32 = arith.constant 0 : i32
    %c0_i32_0 = arith.constant 0 : i32
    return %c0_i32, %arg1 : i32, i32
  }
  func.func @transform_5(%arg0: i32, %arg1: i32) -> (i32, i32) {
    %c0_i32 = arith.constant 0 : i32
    return %arg0, %arg1 : i32, i32
  }
}

module attributes {stable_mosaic.version = 11 : i64} {
  func.func @kernel(%arg0: i32, %arg1: i32, %arg2: i32, %arg3: i32, %arg4: memref<1x1x8x8xbf16, #tpu.memory_space<vmem>>, %arg5: memref<1x1x8x8xbf16, #tpu.memory_space<vmem>>, %arg6: memref<1x1x8x8xbf16, #tpu.memory_space<vmem>>, %arg7: memref<8x4xf32, #tpu.memory_space<vmem>>, %arg8: memref<8x4xf32, #tpu.memory_space<vmem>>, %arg9: memref<8x4xf32, #tpu.memory_space<vmem>>, %arg10: memref<8x4xf32, #tpu.memory_space<vmem>>, %arg11: memref<1x1x8x8xbf16, #tpu.memory_space<vmem>>, %arg12: memref<8x1xf32, #tpu.memory_space<vmem>>, %arg13: memref<8x1xf32, #tpu.memory_space<vmem>>, %arg14: memref<8x8xf32, #tpu.memory_space<vmem>>) attributes {dimension_semantics = [#tpu.dimension_semantics<parallel>, #tpu.dimension_semantics<parallel>, #tpu.dimension_semantics<parallel>, #tpu.dimension_semantics<arbitrary>], iteration_bounds = array<i64: 2, 4, 1, 1>, scalar_prefetch = 0 : i64, scratch_operands = 3 : i64, tpu.core_type = #tpu.core_type<tc>, window_params = [{transform_indices = @transform_0, window_bounds = array<i64: 1, 1, 8, 8>}, {transform_indices = @transform_1, window_bounds = array<i64: 1, 1, 8, 8>}, {transform_indices = @transform_2, window_bounds = array<i64: 1, 1, 8, 8>}, {transform_indices = @transform_3, window_bounds = array<i64: 8, 4>}, {transform_indices = @transform_4, window_bounds = array<i64: 8, 4>}, {transform_indices = @transform_5, window_bounds = array<i64: 8, 4>}, {transform_indices = @transform_6, window_bounds = array<i64: 8, 4>}, {transform_indices = @transform_7, window_bounds = array<i64: 1, 1, 8, 8>}]} {
    %c0_i32 = arith.constant 0 : i32
    %0 = arith.cmpi eq, %arg3, %c0_i32 : i32
    %1 = arith.extui %0 : i1 to i32
    %c0_i32_0 = arith.constant 0 : i32
    %2 = arith.cmpi ne, %1, %c0_i32_0 : i32
    scf.if %2 {
      %cst_38 = arith.constant 0xFF800000 : f32
      %64 = vector.broadcast %cst_38 : f32 to vector<8x1xf32>
      %c0_39 = arith.constant 0 : index
      %c0_40 = arith.constant 0 : index
      %65 = vector.load %arg12[%c0_39, %c0_40] : memref<8x1xf32, #tpu.memory_space<vmem>>, vector<8x1xf32>
      tpu.vector_store %arg12[%c0_39, %c0_40], %64 {strides = array<i32>} : memref<8x1xf32, #tpu.memory_space<vmem>>, vector<8x1xf32>,
      %cst_41 = arith.constant 0.000000e+00 : f32
      %66 = vector.broadcast %cst_41 : f32 to vector<8x1xf32>
      %c0_42 = arith.constant 0 : index
      %c0_43 = arith.constant 0 : index
      %67 = vector.load %arg13[%c0_42, %c0_43] : memref<8x1xf32, #tpu.memory_space<vmem>>, vector<8x1xf32>
      tpu.vector_store %arg13[%c0_42, %c0_43], %66 {strides = array<i32>} : memref<8x1xf32, #tpu.memory_space<vmem>>, vector<8x1xf32>,
      %cst_44 = arith.constant 0.000000e+00 : f32
      %68 = vector.broadcast %cst_44 : f32 to vector<8x8xf32>
      %c0_45 = arith.constant 0 : index
      %c0_46 = arith.constant 0 : index
      %69 = vector.load %arg14[%c0_45, %c0_46] : memref<8x8xf32, #tpu.memory_space<vmem>>, vector<8x8xf32>
      tpu.vector_store %arg14[%c0_45, %c0_46], %68 {strides = array<i32>} : memref<8x8xf32, #tpu.memory_space<vmem>>, vector<8x8xf32>,
    } else {
    }
    %c0 = arith.constant 0 : index
    %c0_1 = arith.constant 0 : index
    %c0_2 = arith.constant 0 : index
    %c0_3 = arith.constant 0 : index
    %3 = vector.load %arg4[%c0, %c0_1, %c0_2, %c0_3] : memref<1x1x8x8xbf16, #tpu.memory_space<vmem>>, vector<1x1x8x8xbf16>
    %4 = vector.shape_cast %3 : vector<1x1x8x8xbf16> to vector<8x8xbf16>
    %5 = arith.extf %4 : vector<8x8xbf16> to vector<8x8xf32>
    %c0_4 = arith.constant 0 : index
    %c0_5 = arith.constant 0 : index
    %c0_6 = arith.constant 0 : index
    %c0_7 = arith.constant 0 : index
    %6 = vector.load %arg5[%c0_4, %c0_5, %c0_6, %c0_7] : memref<1x1x8x8xbf16, #tpu.memory_space<vmem>>, vector<1x1x8x8xbf16>
    %7 = vector.shape_cast %6 : vector<1x1x8x8xbf16> to vector<8x8xbf16>
    %8 = arith.extf %7 : vector<8x8xbf16> to vector<8x8xf32>
    %c0_8 = arith.constant 0 : index
    %c0_9 = arith.constant 0 : index
    %9 = vector.load %arg7[%c0_8, %c0_9] : memref<8x4xf32, #tpu.memory_space<vmem>>, vector<8x4xf32>
    %c0_10 = arith.constant 0 : index
    %c0_11 = arith.constant 0 : index
    %10 = vector.load %arg8[%c0_10, %c0_11] : memref<8x4xf32, #tpu.memory_space<vmem>>, vector<8x4xf32>
    %11 = vector.extract_strided_slice %5 {offsets = [0, 0], sizes = [8, 4], strides = [1, 1]} : vector<8x8xf32> to vector<8x4xf32>
    %12 = vector.extract_strided_slice %5 {offsets = [0, 4], sizes = [8, 4], strides = [1, 1]} : vector<8x8xf32> to vector<8x4xf32>
    %13 = arith.mulf %11, %9 : vector<8x4xf32>
    %14 = arith.mulf %12, %10 : vector<8x4xf32>
    %15 = arith.subf %13, %14 : vector<8x4xf32>
    %16 = arith.mulf %12, %9 : vector<8x4xf32>
    %17 = arith.mulf %11, %10 : vector<8x4xf32>
    %18 = arith.addf %16, %17 : vector<8x4xf32>
    %19 = tpu.concatenate %15, %18 in 1 : vector<8x4xf32>, vector<8x4xf32> -> vector<8x8xf32>
    %cst = arith.constant 0.353553385 : f32
    %20 = vector.broadcast %cst : f32 to vector<8x8xf32>
    %21 = arith.mulf %19, %20 : vector<8x8xf32>
    %22 = arith.truncf %21 : vector<8x8xf32> to vector<8x8xbf16>
    %c0_12 = arith.constant 0 : index
    %c0_13 = arith.constant 0 : index
    %23 = vector.load %arg9[%c0_12, %c0_13] : memref<8x4xf32, #tpu.memory_space<vmem>>, vector<8x4xf32>
    %c0_14 = arith.constant 0 : index
    %c0_15 = arith.constant 0 : index
    %24 = vector.load %arg10[%c0_14, %c0_15] : memref<8x4xf32, #tpu.memory_space<vmem>>, vector<8x4xf32>
    %25 = vector.extract_strided_slice %8 {offsets = [0, 0], sizes = [8, 4], strides = [1, 1]} : vector<8x8xf32> to vector<8x4xf32>
    %26 = vector.extract_strided_slice %8 {offsets = [0, 4], sizes = [8, 4], strides = [1, 1]} : vector<8x8xf32> to vector<8x4xf32>
    %27 = arith.mulf %25, %23 : vector<8x4xf32>
    %28 = arith.mulf %26, %24 : vector<8x4xf32>
    %29 = arith.subf %27, %28 : vector<8x4xf32>
    %30 = arith.mulf %26, %23 : vector<8x4xf32>
    %31 = arith.mulf %25, %24 : vector<8x4xf32>
    %32 = arith.addf %30, %31 : vector<8x4xf32>
    %33 = tpu.concatenate %29, %32 in 1 : vector<8x4xf32>, vector<8x4xf32> -> vector<8x8xf32>
    %34 = arith.truncf %33 : vector<8x8xf32> to vector<8x8xbf16>
    %cst_16 = arith.constant dense<0.000000e+00> : vector<8x8xf32>
    %35 = tpu.matmul %22, %34, %cst_16 {dimension_numbers = #tpu.dot_dimension_numbers<[1], [1], [0], [0], [0, 0, 1, 0], [], []>} : vector<8x8xbf16>, vector<8x8xbf16>, vector<8x8xf32> -> vector<8x8xf32>
    %c0_17 = arith.constant 0 : index
    %c0_18 = arith.constant 0 : index
    %36 = vector.load %arg12[%c0_17, %c0_18] : memref<8x1xf32, #tpu.memory_space<vmem>>, vector<8x1xf32>
    %cst_19 = arith.constant dense<0xFF800000> : vector<8xf32>
    %37 = vector.multi_reduction <maximumf>, %35, %cst_19 [1] : vector<8x8xf32> to vector<8xf32>
    %38 = vector.shape_cast %37 : vector<8xf32> to vector<8x1xf32>
    %39 = arith.maximumf %36, %38 : vector<8x1xf32>
    %40 = arith.subf %36, %39 : vector<8x1xf32>
    %41 = math.exp %40 : vector<8x1xf32>
    %42 = vector.broadcast %39 : vector<8x1xf32> to vector<8x8xf32>
    %43 = arith.subf %35, %42 : vector<8x8xf32>
    %44 = math.exp %43 : vector<8x8xf32>
    %c0_20 = arith.constant 0 : index
    %c0_21 = arith.constant 0 : index
    %45 = vector.load %arg13[%c0_20, %c0_21] : memref<8x1xf32, #tpu.memory_space<vmem>>, vector<8x1xf32>
    %46 = arith.mulf %41, %45 : vector<8x1xf32>
    %cst_22 = arith.constant dense<0.000000e+00> : vector<8xf32>
    %47 = vector.multi_reduction <add>, %44, %cst_22 [1] : vector<8x8xf32> to vector<8xf32>
    %48 = vector.shape_cast %47 : vector<8xf32> to vector<8x1xf32>
    %49 = arith.addf %46, %48 : vector<8x1xf32>
    %c0_23 = arith.constant 0 : index
    %c0_24 = arith.constant 0 : index
    %50 = vector.load %arg13[%c0_23, %c0_24] : memref<8x1xf32, #tpu.memory_space<vmem>>, vector<8x1xf32>
    tpu.vector_store %arg13[%c0_23, %c0_24], %49 {strides = array<i32>} : memref<8x1xf32, #tpu.memory_space<vmem>>, vector<8x1xf32>,
    %c0_25 = arith.constant 0 : index
    %c0_26 = arith.constant 0 : index
    %51 = vector.load %arg14[%c0_25, %c0_26] : memref<8x8xf32, #tpu.memory_space<vmem>>, vector<8x8xf32>
    %52 = vector.broadcast %41 : vector<8x1xf32> to vector<8x8xf32>
    %53 = arith.mulf %52, %51 : vector<8x8xf32>
    %54 = arith.truncf %44 : vector<8x8xf32> to vector<8x8xbf16>
    %c0_27 = arith.constant 0 : index
    %c0_28 = arith.constant 0 : index
    %c0_29 = arith.constant 0 : index
    %c0_30 = arith.constant 0 : index
    %55 = vector.load %arg6[%c0_27, %c0_28, %c0_29, %c0_30] : memref<1x1x8x8xbf16, #tpu.memory_space<vmem>>, vector<1x1x8x8xbf16>
    %56 = vector.shape_cast %55 : vector<1x1x8x8xbf16> to vector<8x8xbf16>
    %cst_31 = arith.constant dense<0.000000e+00> : vector<8x8xf32>
    %57 = tpu.matmul %54, %56, %cst_31 {dimension_numbers = #tpu.dot_dimension_numbers<[1], [0], [0], [1], [0, 0, 1, 1], [], []>} : vector<8x8xbf16>, vector<8x8xbf16>, vector<8x8xf32> -> vector<8x8xf32>
    %58 = arith.addf %53, %57 : vector<8x8xf32>
    %c0_32 = arith.constant 0 : index
    %c0_33 = arith.constant 0 : index
    %59 = vector.load %arg14[%c0_32, %c0_33] : memref<8x8xf32, #tpu.memory_space<vmem>>, vector<8x8xf32>
    tpu.vector_store %arg14[%c0_32, %c0_33], %58 {strides = array<i32>} : memref<8x8xf32, #tpu.memory_space<vmem>>, vector<8x8xf32>,
    %c0_34 = arith.constant 0 : index
    %c0_35 = arith.constant 0 : index
    %60 = vector.load %arg12[%c0_34, %c0_35] : memref<8x1xf32, #tpu.memory_space<vmem>>, vector<8x1xf32>
    tpu.vector_store %arg12[%c0_34, %c0_35], %39 {strides = array<i32>} : memref<8x1xf32, #tpu.memory_space<vmem>>, vector<8x1xf32>,
    %c0_i32_36 = arith.constant 0 : i32
    %61 = arith.cmpi eq, %arg3, %c0_i32_36 : i32
    %62 = arith.extui %61 : i1 to i32
    %c0_i32_37 = arith.constant 0 : i32
    %63 = arith.cmpi ne, %62, %c0_i32_37 : i32
    scf.if %63 {
      %c0_38 = arith.constant 0 : index
      %c0_39 = arith.constant 0 : index
      %64 = vector.load %arg14[%c0_38, %c0_39] : memref<8x8xf32, #tpu.memory_space<vmem>>, vector<8x8xf32>
      %c0_40 = arith.constant 0 : index
      %c0_41 = arith.constant 0 : index
      %65 = vector.load %arg13[%c0_40, %c0_41] : memref<8x1xf32, #tpu.memory_space<vmem>>, vector<8x1xf32>
      %66 = tpu.reciprocal %65 {approx = true} : vector<8x1xf32> -> vector<8x1xf32>
      %67 = vector.broadcast %66 : vector<8x1xf32> to vector<8x8xf32>
      %68 = arith.mulf %64, %67 : vector<8x8xf32>
      %69 = arith.truncf %68 : vector<8x8xf32> to vector<8x8xbf16>
      %c0_42 = arith.constant 0 : index
      %c0_43 = arith.constant 0 : index
      %c0_44 = arith.constant 0 : index
      %c0_45 = arith.constant 0 : index
      %70 = vector.load %arg11[%c0_42, %c0_43, %c0_44, %c0_45] : memref<1x1x8x8xbf16, #tpu.memory_space<vmem>>, vector<1x1x8x8xbf16>
      %71 = vector.shape_cast %70 : vector<1x1x8x8xbf16> to vector<8x8xbf16>
      %72 = vector.shape_cast %69 : vector<8x8xbf16> to vector<1x1x8x8xbf16>
      tpu.vector_store %arg11[%c0_42, %c0_43, %c0_44, %c0_45], %72 {strides = array<i32>} : memref<1x1x8x8xbf16, #tpu.memory_space<vmem>>, vector<1x1x8x8xbf16>,
    } else {
    }
    return
  }
  func.func @transform_0(%arg0: i32, %arg1: i32, %arg2: i32, %arg3: i32) -> (i32, i32, i32, i32) {
    %c0_i32 = arith.constant 0 : i32
    %c0_i32_0 = arith.constant 0 : i32
    return %arg0, %arg1, %arg2, %c0_i32 : i32, i32, i32, i32
  }
  func.func @transform_1(%arg0: i32, %arg1: i32, %arg2: i32, %arg3: i32) -> (i32, i32, i32, i32) {
    %c0_i32 = arith.constant 0 : i32
    %c0_i32_0 = arith.constant 0 : i32
    return %arg0, %arg1, %arg3, %c0_i32 : i32, i32, i32, i32
  }
  func.func @transform_2(%arg0: i32, %arg1: i32, %arg2: i32, %arg3: i32) -> (i32, i32, i32, i32) {
    %c0_i32 = arith.constant 0 : i32
    %c0_i32_0 = arith.constant 0 : i32
    return %arg0, %arg1, %arg3, %c0_i32 : i32, i32, i32, i32
  }
  func.func @transform_3(%arg0: i32, %arg1: i32, %arg2: i32, %arg3: i32) -> (i32, i32) {
    %c0_i32 = arith.constant 0 : i32
    %c0_i32_0 = arith.constant 0 : i32
    return %arg2, %c0_i32 : i32, i32
  }
  func.func @transform_4(%arg0: i32, %arg1: i32, %arg2: i32, %arg3: i32) -> (i32, i32) {
    %c0_i32 = arith.constant 0 : i32
    %c0_i32_0 = arith.constant 0 : i32
    return %arg2, %c0_i32 : i32, i32
  }
  func.func @transform_5(%arg0: i32, %arg1: i32, %arg2: i32, %arg3: i32) -> (i32, i32) {
    %c0_i32 = arith.constant 0 : i32
    %c0_i32_0 = arith.constant 0 : i32
    return %arg3, %c0_i32 : i32, i32
  }
  func.func @transform_6(%arg0: i32, %arg1: i32, %arg2: i32, %arg3: i32) -> (i32, i32) {
    %c0_i32 = arith.constant 0 : i32
    %c0_i32_0 = arith.constant 0 : i32
    return %arg3, %c0_i32 : i32, i32
  }
  func.func @transform_7(%arg0: i32, %arg1: i32, %arg2: i32, %arg3: i32) -> (i32, i32, i32, i32) {
    %c0_i32 = arith.constant 0 : i32
    %c0_i32_0 = arith.constant 0 : i32
    return %arg0, %arg1, %arg2, %c0_i32 : i32, i32, i32, i32
  }
}

module attributes {stable_mosaic.version = 11 : i64} {
  func.func @_layernorm_kernel(%arg0: i32, %arg1: memref<16x32xf32, #tpu.memory_space<vmem>>, %arg2: memref<1x32xf32, #tpu.memory_space<vmem>>, %arg3: memref<1x32xf32, #tpu.memory_space<vmem>>, %arg4: memref<16x32xf32, #tpu.memory_space<vmem>>) attributes {dimension_semantics = [#tpu.dimension_semantics<parallel>], iteration_bounds = array<i64: 1>, scalar_prefetch = 0 : i64, scratch_operands = 0 : i64, tpu.core_type = #tpu.core_type<tc>, window_params = [{transform_indices = @transform_0, window_bounds = array<i64: 16, 32>}, {pipeline_mode = #tpu.pipeline_mode<synchronous>, transform_indices = @transform_1, window_bounds = array<i64: 1, 32>}, {pipeline_mode = #tpu.pipeline_mode<synchronous>, transform_indices = @transform_2, window_bounds = array<i64: 1, 32>}, {transform_indices = @transform_3, window_bounds = array<i64: 16, 32>}]} {
    %c0 = arith.constant 0 : index
    %c0_0 = arith.constant 0 : index
    %0 = vector.load %arg1[%c0, %c0_0] : memref<16x32xf32, #tpu.memory_space<vmem>>, vector<16x32xf32>
    %cst = arith.constant dense<0.000000e+00> : vector<16xf32>
    %1 = vector.multi_reduction <add>, %0, %cst [1] : vector<16x32xf32> to vector<16xf32>
    %2 = vector.shape_cast %1 : vector<16xf32> to vector<16x1xf32>
    %cst_1 = arith.constant 3.200000e+01 : f32
    %3 = vector.broadcast %cst_1 : f32 to vector<16x1xf32>
    %4 = arith.divf %2, %3 : vector<16x1xf32>
    %5 = vector.broadcast %4 : vector<16x1xf32> to vector<16x32xf32>
    %6 = arith.subf %0, %5 : vector<16x32xf32>
    %7 = arith.mulf %6, %6 : vector<16x32xf32>
    %cst_2 = arith.constant dense<0.000000e+00> : vector<16xf32>
    %8 = vector.multi_reduction <add>, %7, %cst_2 [1] : vector<16x32xf32> to vector<16xf32>
    %9 = vector.shape_cast %8 : vector<16xf32> to vector<16x1xf32>
    %cst_3 = arith.constant 3.200000e+01 : f32
    %10 = vector.broadcast %cst_3 : f32 to vector<16x1xf32>
    %11 = arith.divf %9, %10 : vector<16x1xf32>
    %cst_4 = arith.constant 9.99999974E-6 : f32
    %12 = vector.broadcast %cst_4 : f32 to vector<16x1xf32>
    %13 = arith.addf %11, %12 : vector<16x1xf32>
    %14 = math.rsqrt %13 : vector<16x1xf32>
    %15 = vector.broadcast %14 : vector<16x1xf32> to vector<16x32xf32>
    %16 = arith.mulf %6, %15 : vector<16x32xf32>
    %c0_5 = arith.constant 0 : index
    %c0_6 = arith.constant 0 : index
    %17 = vector.load %arg2[%c0_5, %c0_6] : memref<1x32xf32, #tpu.memory_space<vmem>>, vector<1x32xf32>
    %18 = vector.broadcast %17 : vector<1x32xf32> to vector<16x32xf32>
    %19 = arith.mulf %16, %18 : vector<16x32xf32>
    %c0_7 = arith.constant 0 : index
    %c0_8 = arith.constant 0 : index
    %20 = vector.load %arg3[%c0_7, %c0_8] : memref<1x32xf32, #tpu.memory_space<vmem>>, vector<1x32xf32>
    %21 = vector.broadcast %20 : vector<1x32xf32> to vector<16x32xf32>
    %22 = arith.addf %19, %21 : vector<16x32xf32>
    %c0_9 = arith.constant 0 : index
    %c0_10 = arith.constant 0 : index
    %23 = vector.load %arg4[%c0_9, %c0_10] : memref<16x32xf32, #tpu.memory_space<vmem>>, vector<16x32xf32>
    tpu.vector_store %arg4[%c0_9, %c0_10], %22 {strides = array<i32>} : memref<16x32xf32, #tpu.memory_space<vmem>>, vector<16x32xf32>,
    return
  }
  func.func @transform_0(%arg0: i32) -> (i32, i32) {
    %c0_i32 = arith.constant 0 : i32
    %c0_i32_0 = arith.constant 0 : i32
    return %arg0, %c0_i32 : i32, i32
  }
  func.func @transform_1(%arg0: i32) -> (i32, i32) {
    %c0_i32 = arith.constant 0 : i32
    %c0_i32_0 = arith.constant 0 : i32
    %c0_i32_1 = arith.constant 0 : i32
    return %c0_i32, %c0_i32_0 : i32, i32
  }
  func.func @transform_2(%arg0: i32) -> (i32, i32) {
    %c0_i32 = arith.constant 0 : i32
    %c0_i32_0 = arith.constant 0 : i32
    %c0_i32_1 = arith.constant 0 : i32
    return %c0_i32, %c0_i32_0 : i32, i32
  }
  func.func @transform_3(%arg0: i32) -> (i32, i32) {
    %c0_i32 = arith.constant 0 : i32
    %c0_i32_0 = arith.constant 0 : i32
    return %arg0, %c0_i32 : i32, i32
  }
}

</mosaic_0001>

<bundles_post_ra>
// kernel: _lambda_.17
= control target key start
LH: loop header
LB: loop body
LE: loop exit
PB: predicated region body
PF: predicated region fallthrough
CT: control target
= control target key end

     0   :  { %vm27_vm0 = vcmask 261120   ;;  %v188_v15 = vmov 0.0   ;;  %vm189_vm1 = vmmov 0   ;;  %vm152_vm2 = vcmask 781312   ;;  %s253_s0 = inlined_call_operand.vmem [shape: f32[16,32], index: 0, kind: input, shape index: {}]   ;;  %s254_s3 = inlined_call_operand.vmem [shape: bf16[32,96], index: 3, kind: input, shape index: {}]   ;;  %s255_s1 = inlined_call_operand.vmem [shape: f32[1,32], index: 1, kind: input, shape index: {}]   ;;  %s256_s2 = inlined_call_operand.vmem [shape: f32[1,32], index: 2, kind: input, shape index: {}]   ;;  %s257_s4 = inlined_call_operand.vmem [shape: f32[1,96], index: 4, kind: input, shape index: {}]   ;;  %s258_s5 = inlined_call_operand.vmem [shape: bf16[16,96], index: 5, kind: output, shape index: {}]  }
   0x1   :  { %v25_v0 = vld [vmem:[%s253_s0] sm:$0xff]  ;;  %v26_v1 = vld [vmem:[%s253_s0 + $0x8] sm:$0xff]  ;;  %172 = vmatprep.subr.bf16.mxu0 %v188_v15  ;;  %176 = vmatprep.mubr.msk.bf16.mxu0 %vm189_vm1, %v188_v15 }
   0x2   :  { %v28_v2 = vsel %vm27_vm0, %v25_v0, 0.0  ;;  %v31_v3 = vsel %vm27_vm0, %v26_v1, 0.0  ;;  %v182_v14 = vld [vmem:[%s254_s3] sm:$0xff]   ;;  %v183_v16 = vld [vmem:[%s254_s3 + $0x8] sm:$0xff]  }
   0x3   :  { %29 = vadd.xlane.f32.xlu0 %v28_v2  ;;  %173 = vmatpush3.bf16.msra.mxu0 %v182_v14  ;;  %v159_v25 = vld [vmem:[%s255_s1] ss:$0 sm:$0xff] }
   0x4   :  { %174 = vmatprep.subr.bf16.mxu0 %v188_v15  ;;  %v160_v29 = vld [vmem:[%s256_s2] ss:$0 sm:$0xff] }
   0x5   :  { %v161_v35 = vld [vmem:[%s257_s4] ss:$0 sm:$0xff] }
   0x7   :  { %32 = vadd.xlane.f32.xlu0 %v31_v3  ;;  %175 = vmatpush3.bf16.msra.mxu0 %v183_v16 }
  0x90   :  { %v30_v4 = vpop.xlane.xlu0 %29 }
  0x91   :  { %v35_v5 = vmul.f32 0.03125, %v30_v4 }
  0x93   :  { %v37_v6 = vsub.f32 %v25_v0, %v35_v5 }
  0x94   :  { %v33_v7 = vpop.xlane.xlu0 %32 }
  0x95   :  { %v36_v8 = vmul.f32 0.03125, %v33_v7  ;;  %v39_v9 = vmul.f32 %v37_v6, %v37_v6 }
  0x97   :  { %v38_v10 = vsub.f32 %v26_v1, %v36_v8  ;;  %v41_v11 = vsel %vm27_vm0, %v39_v9, 0.0 }
  0x98   :  { %42 = vadd.xlane.f32.xlu1 %v41_v11 }
  0x99   :  { %v40_v12 = vmul.f32 %v38_v10, %v38_v10 }
  0x9b   :  { %v44_v13 = vsel %vm27_vm0, %v40_v12, 0.0 }
  0x9c   :  { %45 = vadd.xlane.f32.xlu1 %v44_v13 }
 0x125   :  { %v43_v17 = vpop.xlane.xlu1 %42 }
 0x126   :  { %v47_v18 = vmul.f32 0.03125, %v43_v17 }
 0x128   :  { %v49_v19 = vadd.f32 1e-05, %v47_v18 }
 0x129   :  { %v46_v20 = vpop.xlane.xlu1 %45 }
 0x12a   :  { %184 = vrsqrt.f32 %v49_v19  ;;  %v48_v21 = vmul.f32 0.03125, %v46_v20 }
 0x12c   :  { %v50_v22 = vadd.f32 1e-05, %v48_v21 }
 0x12e   :  { %186 = vrsqrt.f32 %v50_v22 }
 0x134   :  { %v185_v23 = vpop.eup %184 }
 0x135   :  { %v53_v24 = vmul.f32 %v185_v23, %v37_v6 }
 0x137   :  { %v62_v27 = vmul.f32 %v159_v25, %v53_v24 }
 0x138   :  { %v187_v26 = vpop.eup %186 }
 0x139   :  { %v54_v28 = vmul.f32 %v187_v26, %v38_v10  ;;  %v71_v31 = vadd.f32 %v160_v29, %v62_v27 }
 0x13b   :  { %v63_v30 = vmul.f32 %v159_v25, %v54_v28 }
 0x13d   :  { %v72_v32 = vadd.f32 %v160_v29, %v63_v30 }
 0x13f   :  { %v73_v33 = vpack.c.bf16 %v72_v32, %v71_v31 }
 0x141   :  { %74 = vst.msk [vmem:[#allocation2] sm:$0xff] %vm27_vm0, %v73_v33 }
 0x148   :  { %v75_v34 = vld [vmem:[#allocation2] sm:$0xff] }
 0x149   :  { %177 = vmatmul.mubr.msk.bf16.vlgmr.msra.gmra.mrb[0].mxu0 %vm27_vm0, %v75_v34 }
 0x21c   :  { %v137_v36 = vpop.f32.mrb[0].mxu0 }
 0x21d   :  { %v138_v37 = vadd.f32 %v161_v35, %v137_v36  ;;  %v178_v38 = vpop.f32.mrb[1].mxu0 }
 0x21e   :  { %v140_v39 = vpop.f32.mrb[2].mxu0 }
 0x21f   :  { %v167_v40 = vpack.c.bf16 %v138_v37, %v138_v37  ;;  %v141_v41 = vadd.f32 %v161_v35, %v140_v39  ;;  %v179_v42 = vpop.f32.mrb[3].mxu0 }
 0x221   :  { %153 = vst.msk [vmem:[%s258_s5] sm:$0xf] %vm152_vm2, %v167_v40  ;;  %v168_v43 = vpack.c.bf16 %v141_v41, %v141_v41 }
 0x223   :  { %154 = vst.msk [vmem:[%s258_s5 + $0x4] sm:$0xf] %vm152_vm2, %v168_v43 }

// kernel: _lambda_.15
= control target key start
LH: loop header
LB: loop body
LE: loop exit
PB: predicated region body
PF: predicated region fallthrough
CT: control target
= control target key end

     0   :  { %v30_v0 = vlaneseq  ;;  %s291_s20 = smov 16   ;;  %s292_s21 = smov 32   ;;  %vm130_vm0 = vcmask 130048   ;;  %vm238_vm1 = vcmask 125952   ;;  %s355_s1 = inlined_call_operand.vmem [shape: f32[3,16], index: 1, kind: input, shape index: {}]   ;;  %s356_s0 = inlined_call_operand.vmem [shape: bf16[32,48], index: 0, kind: input, shape index: {}]   ;;  %s357_s3 = inlined_call_operand.vmem [shape: bf16[16,16], index: 3, kind: input, shape index: {}]   ;;  %s358_s2 = inlined_call_operand.vmem [shape: f32[1,16], index: 2, kind: input, shape index: {}]   ;;  %s359_s4 = inlined_call_operand.vmem [shape: f32[1,16], index: 4, kind: input, shape index: {}]   ;;  %s360_s5 = inlined_call_operand.vmem [shape: bf16[32,16], index: 5, kind: output, shape index: {}]  }
   0x1   :  { %v29_v2 = vld [vmem:[%s355_s1] sm:$0x7]  ;;  %v268_v9 = vld [vmem:[%s356_s0 + $0x8] sm:$0xff]   ;;  %s293_s1 = smov 112  }
   0x2   :  { %v31_v1 = vshrl.u32 %v30_v0, 7  ;;  %v261_v10 = vld [vmem:[%s356_s0] sm:$0xff]   ;;  %v266_v11 = vunpack.c.l.bf16 %v268_v9  ;;  %v267_v17 = vunpack.c.h.bf16 %v268_v9  ;;  %s294_s0 = smov 96  }
   0x3   :  { %v262_v12 = vunpack.c.l.bf16 %v261_v10  ;;  %v263_v15 = vunpack.c.h.bf16 %v261_v10  ;;  %v282_v25 = vld [vmem:[%s357_s3] sm:$0xff]  }
   0x4   :  { %v32_v3 = vsub.s32 0, %v31_v1  ;;  %v40_v4 = vsub.s32 1, %v31_v1  ;;  %v72_v5 = vsub.s32 2, %v31_v1  ;;  %272 = vmatprep.subr.bf16.mxu0 %v282_v25  ;;  %v247_v38 = vld [vmem:[%s358_s2] ss:$0 sm:$0xff] }
   0x5   :  { %273 = vmatpush3.bf16.msra.mxu0 %v282_v25  ;;  %v248_v53 = vld [vmem:[%s359_s4] ss:$0 sm:$0xff] }
   0x6   :  { %v41_v6 = vrot.slane %v29_v2, %v40_v4  ;;  %v33_v7 = vrot.slane %v29_v2, %v32_v3  ;;  %v73_v8 = vrot.slane %v29_v2, %v72_v5 }
   0x8   :  { %43 = vrot.lane.b32.xlu0 %v41_v6, %s291_s20  ;;  %v36_v13 = vmul.f32 %v266_v11, %v33_v7  ;;  %v34_v14 = vmul.f32 %v262_v12, %v33_v7  ;;  %v35_v16 = vmul.f32 %v263_v15, %v33_v7  ;;  %v37_v18 = vmul.f32 %v267_v17, %v33_v7 }
   0xc   :  { %75 = vrot.lane.b32.xlu0 %v73_v8, %s292_s21 }
  0x7a   :  { %v44_v19 = vpop.permute.xlu0 %43 }
  0x7b   :  { %v48_v20 = vmul.f32 %v266_v11, %v44_v19  ;;  %v46_v21 = vmul.f32 %v262_v12, %v44_v19  ;;  %v47_v24 = vmul.f32 %v263_v15, %v44_v19  ;;  %v49_v27 = vmul.f32 %v267_v17, %v44_v19 }
  0x7d   :  { %58 = vrot.lane.b32.xlu0 %v48_v20, %s293_s1  ;;  %54 = vrot.lane.b32.xlu1 %v46_v21, %s293_s1 }
  0x7e   :  { %v76_v22 = vpop.permute.xlu0 %75 }
  0x7f   :  { %v78_v23 = vmul.f32 %v262_v12, %v76_v22  ;;  %v80_v26 = vmul.f32 %v266_v11, %v76_v22  ;;  %v79_v28 = vmul.f32 %v263_v15, %v76_v22  ;;  %v81_v29 = vmul.f32 %v267_v17, %v76_v22 }
  0x81   :  { %86 = vrot.lane.b32.xlu0 %v78_v23, %s294_s0  ;;  %56 = vrot.lane.b32.xlu1 %v47_v24, %s293_s1 }
  0x85   :  { %90 = vrot.lane.b32.xlu0 %v80_v26, %s294_s0  ;;  %60 = vrot.lane.b32.xlu1 %v49_v27, %s293_s1 }
  0x89   :  { %88 = vrot.lane.b32.xlu1 %v79_v28, %s294_s0 }
  0x8d   :  { %92 = vrot.lane.b32.xlu1 %v81_v29, %s294_s0 }
  0xef   :  { %v59_v30 = vpop.permute.xlu0 %58  ;;  %v55_v31 = vpop.permute.xlu1 %54 }
  0xf0   :  { %v66_v35 = vadd.f32 %v55_v31, %v34_v14  ;;  %v68_v41 = vadd.f32 %v59_v30, %v36_v13 }
  0xf3   :  { %v57_v32 = vpop.permute.xlu1 %56  ;;  %v87_v33 = vpop.permute.xlu0 %86 }
  0xf4   :  { %v98_v36 = vadd.f32 %v87_v33, %v66_v35  ;;  %v67_v37 = vadd.f32 %v57_v32, %v35_v16 }
  0xf6   :  { %v109_v43 = vadd.f32 %v247_v38, %v98_v36 }
  0xf7   :  { %v61_v34 = vpop.permute.xlu1 %60  ;;  %v91_v39 = vpop.permute.xlu0 %90 }
  0xf8   :  { %v100_v44 = vadd.f32 %v91_v39, %v68_v41  ;;  %v69_v45 = vadd.f32 %v61_v34, %v37_v18 }
  0xfa   :  { %v111_v50 = vadd.f32 %v247_v38, %v100_v44 }
  0xfb   :  { %v89_v40 = vpop.permute.xlu1 %88 }
  0xfc   :  { %v99_v42 = vadd.f32 %v89_v40, %v67_v37 }
  0xfe   :  { %v110_v46 = vadd.f32 %v247_v38, %v99_v42 }
  0xff   :  { %v93_v47 = vpop.permute.xlu1 %92 }
 0x100   :  { %v101_v48 = vadd.f32 %v93_v47, %v69_v45  ;;  %v113_v49 = vpack.c.bf16 %v110_v46, %v109_v43 }
 0x102   :  { %v112_v51 = vadd.f32 %v247_v38, %v101_v48  ;;  %274 = vmatprep.mubr.msk.bf16.mxu0 %vm130_vm0, %v113_v49 }
 0x104   :  { %v114_v52 = vpack.c.bf16 %v112_v51, %v111_v50 }
 0x106   :  { %275 = vmatmul.mubr.msk.bf16.vlgmr.msra.gmra.mrb[0].mxu0 %vm130_vm0, %v114_v52 }
 0x1d9   :  { %v276_v54 = vpop.f32.mrb[0].mxu0 }
 0x1da   :  { %v180_v55 = vadd.f32 %v276_v54, %v248_v53  ;;  %v171_v56 = vpop.f32.mrb[1].mxu0 }
 0x1db   :  { %v172_v57 = vadd.f32 %v248_v53, %v171_v56  ;;  %v277_v58 = vpop.f32.mrb[2].mxu0 }
 0x1dc   :  { %v192_v59 = vmul.f32 0.044715, %v180_v55  ;;  %v183_v60 = vadd.f32 %v277_v58, %v248_v53  ;;  %v174_v61 = vpop.f32.mrb[3].mxu0  ;;  %v188_v20 = vmul.f32 0.5, %v180_v55 }
 0x1dd   :  { %v190_v62 = vmul.f32 0.044715, %v172_v57  ;;  %v175_v63 = vadd.f32 %v248_v53, %v174_v61  ;;  %v186_v23 = vmul.f32 0.5, %v172_v57 }
 0x1de   :  { %v196_v0 = vmul.f32 %v192_v59, %v180_v55  ;;  %v193_v1 = vmul.f32 0.044715, %v183_v60  ;;  %v189_v27 = vmul.f32 0.5, %v183_v60 }
 0x1df   :  { %v194_v2 = vmul.f32 %v190_v62, %v172_v57  ;;  %v191_v3 = vmul.f32 0.044715, %v175_v63  ;;  %v187_v30 = vmul.f32 0.5, %v175_v63 }
 0x1e0   :  { %v200_v4 = vmul.f32 %v196_v0, %v180_v55  ;;  %v197_v5 = vmul.f32 %v193_v1, %v183_v60 }
 0x1e1   :  { %v198_v6 = vmul.f32 %v194_v2, %v172_v57  ;;  %v195_v7 = vmul.f32 %v191_v3, %v175_v63 }
 0x1e2   :  { %v204_v8 = vadd.f32 %v200_v4, %v180_v55  ;;  %v201_v9 = vmul.f32 %v197_v5, %v183_v60 }
 0x1e3   :  { %v202_v10 = vadd.f32 %v198_v6, %v172_v57  ;;  %v199_v11 = vmul.f32 %v195_v7, %v175_v63 }
 0x1e4   :  { %v208_v12 = vmul.f32 0.7978846, %v204_v8  ;;  %v205_v13 = vadd.f32 %v201_v9, %v183_v60 }
 0x1e5   :  { %v206_v14 = vmul.f32 0.7978846, %v202_v10  ;;  %v203_v15 = vadd.f32 %v199_v11, %v175_v63 }
 0x1e6   :  { %283 = vtanh.f32 %v208_v12  ;;  %v209_v16 = vmul.f32 0.7978846, %v205_v13 }
 0x1e7   :  { %285 = vtanh.f32 %v206_v14  ;;  %v207_v17 = vmul.f32 0.7978846, %v203_v15 }
 0x1e8   :  { %287 = vtanh.f32 %v209_v16 }
 0x1e9   :  { %289 = vtanh.f32 %v207_v17 }
 0x1f0   :  { %v284_v18 = vpop.eup %283 }
 0x1f1   :  { %v286_v19 = vpop.eup %285  ;;  %v216_v21 = vadd.f32 1.0, %v284_v18 }
 0x1f2   :  { %v288_v22 = vpop.eup %287  ;;  %v214_v24 = vadd.f32 1.0, %v286_v19 }
 0x1f3   :  { %v290_v25 = vpop.eup %289  ;;  %v220_v26 = vmul.f32 %v216_v21, %v188_v20  ;;  %v217_v28 = vadd.f32 1.0, %v288_v22 }
 0x1f4   :  { %v218_v29 = vmul.f32 %v214_v24, %v186_v23  ;;  %v215_v31 = vadd.f32 1.0, %v290_v25 }
 0x1f5   :  { %v258_v32 = vpack.c.bf16 %v220_v26, %v220_v26  ;;  %v221_v33 = vmul.f32 %v217_v28, %v189_v27 }
 0x1f6   :  { %v256_v34 = vpack.c.bf16 %v218_v29, %v218_v29  ;;  %v219_v35 = vmul.f32 %v215_v31, %v187_v30 }
 0x1f7   :  { %241 = vst.msk [vmem:[%s360_s5 + $0x8] sm:$0xf] %vm238_vm1, %v258_v32  ;;  %v259_v36 = vpack.c.bf16 %v221_v33, %v221_v33 }
 0x1f8   :  { %239 = vst.msk [vmem:[%s360_s5] sm:$0xf] %vm238_vm1, %v256_v34  ;;  %v257_v37 = vpack.c.bf16 %v219_v35, %v219_v35 }
 0x1f9   :  { %242 = vst.msk [vmem:[%s360_s5 + $0xc] sm:$0xf] %vm238_vm1, %v259_v36 }
 0x1fa   :  { %240 = vst.msk [vmem:[%s360_s5 + $0x4] sm:$0xf] %vm238_vm1, %v257_v37 }

// kernel: _lambda_.14
= control target key start
LH: loop header
LB: loop body
LE: loop exit
PB: predicated region body
PF: predicated region fallthrough
CT: control target
= control target key end

     0   :  { %vm19_vm0 = vcmask 130048   ;;  %vm89_vm1 = vcmask 1043456   ;;  %v392_v1 = vmov 0.0   ;;  %vm76_vm2 = vcmask 195584   ;;  %s541_s1 = inlined_call_operand.vmem [shape: bf16[24,16], index: 1, kind: input, shape index: {}]   ;;  %s542_s0 = inlined_call_operand.vmem [shape: bf16[64,24], index: 0, kind: input, shape index: {}]   ;;  %s543_s2 = inlined_call_operand.vmem [shape: f32[1,16], index: 2, kind: input, shape index: {}]   ;;  %s544_s3 = inlined_call_operand.vmem [shape: bf16[64,16], index: 3, kind: output, shape index: {}]  }
   0x1   :  { %v370_v0 = vld [vmem:[%s541_s1] sm:$0xff]   ;;  %22 = vst.msk [vmem:[#allocation2 + $0x10] sm:$0xff] %vm19_vm0, %v392_v1  ;;  %20 = vst.msk [vmem:[#allocation2] sm:$0xff] %vm19_vm0, %v392_v1  ;;  %v371_v2 = vld [vmem:[%s541_s1 + $0x8] ss:$0 sps:$4 sm:$0xff]   ;;  %vm305_vm3 = vcmask 125952  }
   0x2   :  { %21 = vst.msk [vmem:[#allocation2 + $0x8] sm:$0xff] %vm19_vm0, %v392_v1  ;;  %23 = vst.msk [vmem:[#allocation2 + $0x18] sm:$0xff] %vm19_vm0, %v392_v1  ;;  %351 = vmatprep.subr.bf16.mxu0 %v370_v0  ;;  %363 = vmatprep.subr.bf16.mxu1 %v370_v0  ;;  %v372_v3 = vld [vmem:[%s542_s0] sm:$0xff]   ;;  %v373_v4 = vld [vmem:[%s542_s0 + $0x10] sm:$0xff]   ;;  %v91_v5 = vsel %vm89_vm1, %v371_v2, 0 }
   0x3   :  { %24 = vst.msk [vmem:[#allocation2 + $0x20] sm:$0xff] %vm19_vm0, %v392_v1  ;;  %25 = vst.msk [vmem:[#allocation2 + $0x28] sm:$0xff] %vm19_vm0, %v392_v1  ;;  %352 = vmatpush3.bf16.msra.mxu0 %v370_v0  ;;  %365 = vmatpush3.bf16.msra.mxu1 %v370_v0  ;;  %v374_v6 = vld [vmem:[%s542_s0 + $0x8] sm:$0xff]   ;;  %v375_v7 = vld [vmem:[%s542_s0 + $0x18] sm:$0xff]  }
   0x4   :  { %26 = vst.msk [vmem:[#allocation2 + $0x30] sm:$0xff] %vm19_vm0, %v392_v1  ;;  %27 = vst.msk [vmem:[#allocation2 + $0x38] sm:$0xff] %vm19_vm0, %v392_v1  ;;  %367 = vmatprep.subr.msk.bf16.mxu0 %vm89_vm1, %v371_v2  ;;  %368 = vmatprep.subr.msk.bf16.mxu1 %vm89_vm1, %v371_v2  ;;  %v328_v32 = vld [vmem:[%s543_s2] ss:$0 sm:$0xff] }
   0x5   :  { %355 = vmatprep.mubr.msk.bf16.mxu0 %vm76_vm2, %v372_v3  ;;  %359 = vmatprep.mubr.msk.bf16.mxu1 %vm76_vm2, %v373_v4 }
   0x7   :  { %354 = vmatpush3.bf16.msra.mxu0 %v91_v5  ;;  %366 = vmatpush3.bf16.msra.mxu1 %v91_v5 }
   0x8   :  { %v30_v8 = vld [vmem:[#allocation2 + $0x10] sm:$0xff]  ;;  %v28_v10 = vld [vmem:[#allocation2] sm:$0xff] }
   0x9   :  { %v31_v14 = vld [vmem:[#allocation2 + $0x18] sm:$0xff]  ;;  %v29_v20 = vld [vmem:[#allocation2 + $0x8] sm:$0xff] }
   0xa   :  { %356 = vmatmul.mubr.msk.bf16.vlgmr.msra.gmra.mrb[0].mxu0 %vm76_vm2, %v374_v6  ;;  %360 = vmatmul.mubr.msk.bf16.vlgmr.msra.gmra.mrb[0].mxu1 %vm76_vm2, %v375_v7  ;;  %v32_v11 = vld [vmem:[#allocation2 + $0x20] sm:$0xff]  ;;  %v33_v21 = vld [vmem:[#allocation2 + $0x28] sm:$0xff] }
   0xb   :  { %v34_v9 = vld [vmem:[#allocation2 + $0x30] sm:$0xff]  ;;  %v35_v15 = vld [vmem:[#allocation2 + $0x38] sm:$0xff] }
  0xdd   :  { %v357_v12 = vpop.f32.mrb[0].mxu0  ;;  %v361_v13 = vpop.f32.mrb[0].mxu1 }
  0xde   :  { %v160_v16 = vadd.f32 %v357_v12, %v30_v8  ;;  %v164_v17 = vadd.f32 %v361_v13, %v34_v9  ;;  %v127_v18 = vpop.f32.mrb[1].mxu0  ;;  %v143_v19 = vpop.f32.mrb[1].mxu1 }
  0xdf   :  { %v158_v22 = vadd.f32 %v127_v18, %v28_v10  ;;  %v162_v23 = vadd.f32 %v143_v19, %v32_v11  ;;  %v358_v24 = vpop.f32.mrb[2].mxu0  ;;  %v362_v25 = vpop.f32.mrb[2].mxu1 }
  0xe0   :  { %169 = vst.msk [vmem:[#allocation2 + $0x10] sm:$0xff] %vm19_vm0, %v160_v16  ;;  %173 = vst.msk [vmem:[#allocation2 + $0x30] sm:$0xff] %vm19_vm0, %v164_v17  ;;  %v161_v26 = vadd.f32 %v358_v24, %v31_v14  ;;  %v165_v27 = vadd.f32 %v362_v25, %v35_v15  ;;  %v130_v28 = vpop.f32.mrb[3].mxu0  ;;  %v146_v29 = vpop.f32.mrb[3].mxu1 }
  0xe1   :  { %167 = vst.msk [vmem:[#allocation2] sm:$0xff] %vm19_vm0, %v158_v22  ;;  %171 = vst.msk [vmem:[#allocation2 + $0x20] sm:$0xff] %vm19_vm0, %v162_v23  ;;  %v159_v30 = vadd.f32 %v130_v28, %v29_v20  ;;  %v163_v31 = vadd.f32 %v146_v29, %v33_v21 }
  0xe2   :  { %170 = vst.msk [vmem:[#allocation2 + $0x18] sm:$0xff] %vm19_vm0, %v161_v26  ;;  %174 = vst.msk [vmem:[#allocation2 + $0x38] sm:$0xff] %vm19_vm0, %v165_v27 }
  0xe3   :  { %168 = vst.msk [vmem:[#allocation2 + $0x8] sm:$0xff] %vm19_vm0, %v159_v30  ;;  %172 = vst.msk [vmem:[#allocation2 + $0x28] sm:$0xff] %vm19_vm0, %v163_v31 }
  0xe7   :  { %v180_v33 = vld [vmem:[#allocation2 + $0x10] sm:$0xff] }
  0xe8   :  { %v184_v34 = vld [vmem:[#allocation2 + $0x30] sm:$0xff]  ;;  %v453_v35 = vadd.f32 %v328_v32, %v180_v33  ;;  %v178_v37 = vld [vmem:[#allocation2] sm:$0xff] }
  0xe9   :  { %v455_v36 = vadd.f32 %v328_v32, %v184_v34  ;;  %v182_v38 = vld [vmem:[#allocation2 + $0x20] sm:$0xff]  ;;  %v457_v39 = vadd.f32 %v328_v32, %v178_v37  ;;  %v181_v41 = vld [vmem:[#allocation2 + $0x18] sm:$0xff] }
  0xea   :  { %v459_v40 = vadd.f32 %v328_v32, %v182_v38  ;;  %v185_v42 = vld [vmem:[#allocation2 + $0x38] sm:$0xff]  ;;  %v211_v43 = vmul.f32 0.044715, %v453_v35  ;;  %v467_v49 = vadd.f32 %v328_v32, %v181_v41  ;;  %v179_v51 = vld [vmem:[#allocation2 + $0x8] sm:$0xff]  ;;  %v203_v27 = vmul.f32 0.5, %v453_v35 }
  0xeb   :  { %v215_v44 = vmul.f32 0.044715, %v455_v36  ;;  %v209_v45 = vmul.f32 0.044715, %v457_v39  ;;  %v469_v50 = vadd.f32 %v328_v32, %v185_v42  ;;  %v473_v54 = vadd.f32 %v328_v32, %v179_v51  ;;  %v183_v55 = vld [vmem:[#allocation2 + $0x28] sm:$0xff] }
  0xec   :  { %v213_v46 = vmul.f32 0.044715, %v459_v40  ;;  %v219_v47 = vmul.f32 %v211_v43, %v453_v35  ;;  %v212_v58 = vmul.f32 0.044715, %v467_v49  ;;  %v484_v1 = vadd.f32 %v328_v32, %v183_v55 }
  0xed   :  { %v223_v48 = vmul.f32 %v215_v44, %v455_v36  ;;  %v217_v52 = vmul.f32 %v209_v45, %v457_v39  ;;  %v216_v61 = vmul.f32 0.044715, %v469_v50  ;;  %v210_v5 = vmul.f32 0.044715, %v473_v54 }
  0xee   :  { %v221_v53 = vmul.f32 %v213_v46, %v459_v40  ;;  %v227_v56 = vmul.f32 %v219_v47, %v453_v35  ;;  %v220_v0 = vmul.f32 %v212_v58, %v467_v49  ;;  %v214_v14 = vmul.f32 0.044715, %v484_v1 }
  0xef   :  { %v231_v57 = vmul.f32 %v223_v48, %v455_v36  ;;  %v225_v59 = vmul.f32 %v217_v52, %v457_v39  ;;  %v224_v4 = vmul.f32 %v216_v61, %v469_v50  ;;  %v218_v12 = vmul.f32 %v210_v5, %v473_v54 }
  0xf0   :  { %v229_v60 = vmul.f32 %v221_v53, %v459_v40  ;;  %v235_v62 = vadd.f32 %v227_v56, %v453_v35  ;;  %v228_v8 = vmul.f32 %v220_v0, %v467_v49  ;;  %v222_v18 = vmul.f32 %v214_v14, %v484_v1 }
  0xf1   :  { %v239_v63 = vadd.f32 %v231_v57, %v455_v36  ;;  %v233_v2 = vadd.f32 %v225_v59, %v457_v39  ;;  %v232_v11 = vmul.f32 %v224_v4, %v469_v50  ;;  %v226_v16 = vmul.f32 %v218_v12, %v473_v54 }
  0xf2   :  { %v237_v3 = vadd.f32 %v229_v60, %v459_v40  ;;  %v243_v6 = vmul.f32 0.7978846, %v235_v62  ;;  %v236_v13 = vadd.f32 %v228_v8, %v467_v49  ;;  %v230_v21 = vmul.f32 %v222_v18, %v484_v1 }
  0xf3   :  { %v247_v7 = vmul.f32 0.7978846, %v239_v63  ;;  %v241_v9 = vmul.f32 0.7978846, %v233_v2  ;;  %v240_v15 = vadd.f32 %v232_v11, %v469_v50  ;;  %v234_v20 = vadd.f32 %v226_v16, %v473_v54 }
  0xf4   :  { %v245_v10 = vmul.f32 0.7978846, %v237_v3  ;;  %376 = vtanh.f32 %v243_v6  ;;  %v244_v17 = vmul.f32 0.7978846, %v236_v13  ;;  %v238_v23 = vadd.f32 %v230_v21, %v484_v1 }
  0xf5   :  { %378 = vtanh.f32 %v247_v7  ;;  %v248_v19 = vmul.f32 0.7978846, %v240_v15  ;;  %v242_v22 = vmul.f32 0.7978846, %v234_v20  ;;  %v207_v30 = vmul.f32 0.5, %v455_v36 }
  0xf6   :  { %380 = vtanh.f32 %v241_v9  ;;  %v246_v24 = vmul.f32 0.7978846, %v238_v23  ;;  %v201_v34 = vmul.f32 0.5, %v457_v39  ;;  %v205_v42 = vmul.f32 0.5, %v459_v40 }
  0xf7   :  { %382 = vtanh.f32 %v245_v10  ;;  %v204_v35 = vmul.f32 0.5, %v467_v49  ;;  %v208_v51 = vmul.f32 0.5, %v469_v50  ;;  %v202_v56 = vmul.f32 0.5, %v473_v54 }
  0xf8   :  { %384 = vtanh.f32 %v244_v17  ;;  %v206_v54 = vmul.f32 0.5, %v484_v1 }
  0xf9   :  { %386 = vtanh.f32 %v248_v19 }
  0xfa   :  { %388 = vtanh.f32 %v242_v22 }
  0xfb   :  { %390 = vtanh.f32 %v246_v24 }
  0xfe   :  { %v377_v25 = vpop.eup %376 }
  0xff   :  { %v379_v26 = vpop.eup %378  ;;  %v259_v28 = vadd.f32 1.0, %v377_v25 }
 0x100   :  { %v381_v29 = vpop.eup %380  ;;  %v263_v31 = vadd.f32 1.0, %v379_v26 }
 0x101   :  { %v383_v32 = vpop.eup %382  ;;  %v267_v33 = vmul.f32 %v259_v28, %v203_v27  ;;  %v257_v37 = vadd.f32 1.0, %v381_v29 }
 0x102   :  { %v385_v38 = vpop.eup %384  ;;  %v271_v41 = vmul.f32 %v263_v31, %v207_v30  ;;  %v261_v43 = vadd.f32 1.0, %v383_v32 }
 0x103   :  { %v387_v44 = vpop.eup %386  ;;  %v339_v45 = vpack.c.bf16 %v267_v33, %v267_v33  ;;  %v265_v46 = vmul.f32 %v257_v37, %v201_v34  ;;  %v260_v47 = vadd.f32 1.0, %v385_v38 }
 0x104   :  { %v343_v48 = vpack.c.bf16 %v271_v41, %v271_v41  ;;  %v269_v36 = vmul.f32 %v261_v43, %v205_v42  ;;  %v264_v52 = vadd.f32 1.0, %v387_v44  ;;  %v389_v53 = vpop.eup %388 }
 0x105   :  { %308 = vst.msk [vmem:[%s544_s3 + $0x8] sm:$0xf] %vm305_vm3, %v339_v45  ;;  %v337_v39 = vpack.c.bf16 %v265_v46, %v265_v46  ;;  %v268_v40 = vmul.f32 %v260_v47, %v204_v35  ;;  %v258_v57 = vadd.f32 1.0, %v389_v53  ;;  %v391_v58 = vpop.eup %390 }
 0x106   :  { %312 = vst.msk [vmem:[%s544_s3 + $0x18] sm:$0xf] %vm305_vm3, %v343_v48  ;;  %v341_v49 = vpack.c.bf16 %v269_v36, %v269_v36  ;;  %v272_v55 = vmul.f32 %v264_v52, %v208_v51  ;;  %v262_v61 = vadd.f32 1.0, %v391_v58 }
 0x107   :  { %306 = vst.msk [vmem:[%s544_s3] sm:$0xf] %vm305_vm3, %v337_v39  ;;  %v340_v50 = vpack.c.bf16 %v268_v40, %v268_v40  ;;  %v266_v60 = vmul.f32 %v258_v57, %v202_v56 }
 0x108   :  { %310 = vst.msk [vmem:[%s544_s3 + $0x10] sm:$0xf] %vm305_vm3, %v341_v49  ;;  %v344_v59 = vpack.c.bf16 %v272_v55, %v272_v55  ;;  %v270_v63 = vmul.f32 %v262_v61, %v206_v54 }
 0x109   :  { %309 = vst.msk [vmem:[%s544_s3 + $0xc] sm:$0xf] %vm305_vm3, %v340_v50  ;;  %v338_v62 = vpack.c.bf16 %v266_v60, %v266_v60 }
 0x10a   :  { %313 = vst.msk [vmem:[%s544_s3 + $0x1c] sm:$0xf] %vm305_vm3, %v344_v59  ;;  %v342_v0 = vpack.c.bf16 %v270_v63, %v270_v63 }
 0x10b   :  { %307 = vst.msk [vmem:[%s544_s3 + $0x4] sm:$0xf] %vm305_vm3, %v338_v62 }
 0x10c   :  { %311 = vst.msk [vmem:[%s544_s3 + $0x14] sm:$0xf] %vm305_vm3, %v342_v0 }

// kernel: _lambda_.16
= control target key start
LH: loop header
LB: loop body
LE: loop exit
PB: predicated region body
PF: predicated region fallthrough
CT: control target
= control target key end

     0   :  { %v26_v0 = vlaneseq  ;;  %s194_s20 = smov 16   ;;  %s195_s21 = smov 32   ;;  %v196_v16 = vmov 0.0   ;;  %vm198_vm0 = vmmov 0   ;;  %vm97_vm1 = vcmask 130048   ;;  %s251_s1 = inlined_call_operand.vmem [shape: f32[3,16], index: 1, kind: input, shape index: {}]   ;;  %s252_s0 = inlined_call_operand.vmem [shape: bf16[16,48], index: 0, kind: input, shape index: {}]   ;;  %s253_s3 = inlined_call_operand.vmem [shape: bf16[16,32], index: 3, kind: input, shape index: {}]   ;;  %s254_s2 = inlined_call_operand.vmem [shape: f32[1,16], index: 2, kind: input, shape index: {}]   ;;  %s255_s4 = inlined_call_operand.vmem [shape: f32[1,32], index: 4, kind: input, shape index: {}]   ;;  %s256_s5 = inlined_call_operand.vmem [shape: f32[16,32], index: 5, kind: output, shape index: {}]  }
   0x1   :  { %v25_v2 = vld [vmem:[%s251_s1] sm:$0x7]  ;;  %177 = vmatprep.subr.bf16.mxu0 %v196_v16  ;;  %s197_s25 = smov 112   ;;  %179 = vmatprep.mubr.msk.bf16.mxu0 %vm198_vm0, %v196_v16  ;;  %vm160_vm2 = vcmask 261120  }
   0x2   :  { %v27_v1 = vshrl.u32 %v26_v0, 7  ;;  %v172_v9 = vld [vmem:[%s252_s0] sm:$0xff]   ;;  %s199_s0 = smov 96  }
   0x3   :  { %v173_v10 = vunpack.c.l.bf16 %v172_v9  ;;  %v174_v12 = vunpack.c.h.bf16 %v172_v9  ;;  %v189_v14 = vld [vmem:[%s253_s3] sm:$0xff]  }
   0x4   :  { %v34_v3 = vsub.s32 1, %v27_v1  ;;  %v54_v4 = vsub.s32 2, %v27_v1  ;;  %v28_v5 = vsub.s32 0, %v27_v1  ;;  %178 = vmatpush3.bf16.msra.mxu0 %v189_v14  ;;  %v167_v28 = vld [vmem:[%s254_s2] ss:$0 sm:$0xff] }
   0x5   :  { %v168_v34 = vld [vmem:[%s255_s4] ss:$0 sm:$0xff] }
   0x6   :  { %v35_v6 = vrot.slane %v25_v2, %v34_v3  ;;  %v29_v7 = vrot.slane %v25_v2, %v28_v5  ;;  %v55_v8 = vrot.slane %v25_v2, %v54_v4 }
   0x8   :  { %37 = vrot.lane.b32.xlu0 %v35_v6, %s194_s20  ;;  %v30_v11 = vmul.f32 %v173_v10, %v29_v7  ;;  %v31_v13 = vmul.f32 %v174_v12, %v29_v7 }
   0xc   :  { %57 = vrot.lane.b32.xlu0 %v55_v8, %s195_s21 }
  0x7a   :  { %v38_v15 = vpop.permute.xlu0 %37 }
  0x7b   :  { %v40_v17 = vmul.f32 %v173_v10, %v38_v15  ;;  %v41_v19 = vmul.f32 %v174_v12, %v38_v15 }
  0x7d   :  { %44 = vrot.lane.b32.xlu1 %v40_v17, %s197_s25 }
  0x7e   :  { %v58_v18 = vpop.permute.xlu0 %57 }
  0x7f   :  { %v60_v20 = vmul.f32 %v173_v10, %v58_v18  ;;  %v61_v21 = vmul.f32 %v174_v12, %v58_v18 }
  0x81   :  { %64 = vrot.lane.b32.xlu0 %v60_v20, %s199_s0  ;;  %46 = vrot.lane.b32.xlu1 %v41_v19, %s197_s25 }
  0x85   :  { %66 = vrot.lane.b32.xlu1 %v61_v21, %s199_s0 }
  0xef   :  { %v45_v22 = vpop.permute.xlu1 %44 }
  0xf0   :  { %v50_v25 = vadd.f32 %v45_v22, %v30_v11 }
  0xf3   :  { %v65_v23 = vpop.permute.xlu0 %64  ;;  %v47_v24 = vpop.permute.xlu1 %46 }
  0xf4   :  { %v70_v26 = vadd.f32 %v65_v23, %v50_v25  ;;  %v51_v27 = vadd.f32 %v47_v24, %v31_v13 }
  0xf6   :  { %v79_v31 = vadd.f32 %v167_v28, %v70_v26 }
  0xf7   :  { %v67_v29 = vpop.permute.xlu1 %66 }
  0xf8   :  { %v71_v30 = vadd.f32 %v67_v29, %v51_v27 }
  0xfa   :  { %v80_v32 = vadd.f32 %v167_v28, %v71_v30 }
  0xfc   :  { %v81_v33 = vpack.c.bf16 %v80_v32, %v79_v31 }
  0xfe   :  { %180 = vmatmul.mubr.msk.bf16.vlgmr.msra.gmra.mrb[0].mxu0 %vm97_vm1, %v81_v33 }
 0x1d1   :  { %v135_v35 = vpop.f32.mrb[0].mxu0 }
 0x1d2   :  { %v136_v36 = vadd.f32 %v168_v34, %v135_v35  ;;  %v181_v37 = vpop.f32.mrb[1].mxu0 }
 0x1d3   :  { %v138_v38 = vpop.f32.mrb[2].mxu0 }
 0x1d4   :  { %v144_v39 = vmul.f32 0.044715, %v136_v36  ;;  %v139_v40 = vadd.f32 %v168_v34, %v138_v38  ;;  %v182_v41 = vpop.f32.mrb[3].mxu0  ;;  %v142_v52 = vmul.f32 0.5, %v136_v36 }
 0x1d6   :  { %v146_v42 = vmul.f32 %v144_v39, %v136_v36  ;;  %v145_v43 = vmul.f32 0.044715, %v139_v40  ;;  %v143_v56 = vmul.f32 0.5, %v139_v40 }
 0x1d8   :  { %v148_v44 = vmul.f32 %v146_v42, %v136_v36  ;;  %v147_v45 = vmul.f32 %v145_v43, %v139_v40 }
 0x1da   :  { %v150_v46 = vadd.f32 %v148_v44, %v136_v36  ;;  %v149_v47 = vmul.f32 %v147_v45, %v139_v40 }
 0x1dc   :  { %v152_v48 = vmul.f32 0.7978846, %v150_v46  ;;  %v151_v49 = vadd.f32 %v149_v47, %v139_v40 }
 0x1de   :  { %190 = vtanh.f32 %v152_v48  ;;  %v153_v50 = vmul.f32 0.7978846, %v151_v49 }
 0x1e0   :  { %192 = vtanh.f32 %v153_v50 }
 0x1e8   :  { %v191_v51 = vpop.eup %190 }
 0x1e9   :  { %v156_v53 = vadd.f32 1.0, %v191_v51 }
 0x1ea   :  { %v193_v54 = vpop.eup %192 }
 0x1eb   :  { %v158_v55 = vmul.f32 %v156_v53, %v142_v52  ;;  %v157_v57 = vadd.f32 1.0, %v193_v54 }
 0x1ed   :  { %161 = vst.msk [vmem:[%s256_s5] sm:$0xff] %vm160_vm2, %v158_v55  ;;  %v159_v58 = vmul.f32 %v157_v57, %v143_v56 }
 0x1ef   :  { %162 = vst.msk [vmem:[%s256_s5 + $0x8] sm:$0xff] %vm160_vm2, %v159_v58 }

// kernel: _lambda_.19
= control target key start
LH: loop header
LB: loop body
LE: loop exit
PB: predicated region body
PF: predicated region fallthrough
CT: control target
= control target key end

     0   :  { %vm22_vm0 = vcmask 261120   ;;  %v144_v0 = vmov 0.0   ;;  %vm145_vm1 = vmmov 0   ;;  %s202_s1 = inlined_call_operand.vmem [shape: bf16[32,32], index: 1, kind: input, shape index: {}]   ;;  %s203_s0 = inlined_call_operand.vmem [shape: bf16[16,32], index: 0, kind: input, shape index: {}]   ;;  %s204_s2 = inlined_call_operand.vmem [shape: f32[1,32], index: 2, kind: input, shape index: {}]   ;;  %s205_s3 = inlined_call_operand.vmem [shape: f32[16,32], index: 3, kind: input, shape index: {}]   ;;  %s206_s4 = inlined_call_operand.vmem [shape: f32[16,32], index: 4, kind: output, shape index: {}]  }
   0x1   :  { %131 = vmatprep.subr.bf16.mxu0 %v144_v0  ;;  %v141_v1 = vld [vmem:[%s202_s1] sm:$0xff]   ;;  %135 = vmatprep.mubr.msk.bf16.mxu0 %vm145_vm1, %v144_v0  ;;  %23 = vst.msk [vmem:[#allocation2] sm:$0xff] %vm22_vm0, %v144_v0  ;;  %24 = vst.msk [vmem:[#allocation2 + $0x8] sm:$0xff] %vm22_vm0, %v144_v0  ;;  %v142_v2 = vld [vmem:[%s202_s1 + $0x8] sm:$0xff]  }
   0x2   :  { %132 = vmatpush3.bf16.msra.mxu0 %v141_v1  ;;  %v143_v3 = vld [vmem:[%s203_s0] sm:$0xff]   ;;  %v114_v17 = vld [vmem:[%s205_s3 + $0x8] sm:$0xff] }
   0x3   :  { %133 = vmatprep.subr.bf16.mxu0 %v144_v0  ;;  %v127_v12 = vld [vmem:[%s204_s2] ss:$0 sm:$0xff] }
   0x4   :  { %v113_v14 = vld [vmem:[%s205_s3] sm:$0xff] }
   0x6   :  { %134 = vmatpush3.bf16.msra.mxu0 %v142_v2 }
   0x8   :  { %v25_v4 = vld [vmem:[#allocation2] sm:$0xff]  ;;  %v26_v6 = vld [vmem:[#allocation2 + $0x8] sm:$0xff] }
   0x9   :  { %136 = vmatmul.mubr.msk.bf16.vlgmr.msra.gmra.mrb[0].mxu0 %vm22_vm0, %v143_v3 }
  0xdc   :  { %v88_v5 = vpop.f32.mrb[0].mxu0 }
  0xdd   :  { %v95_v7 = vadd.f32 %v88_v5, %v25_v4  ;;  %v137_v8 = vpop.f32.mrb[1].mxu0 }
  0xde   :  { %v91_v9 = vpop.f32.mrb[2].mxu0 }
  0xdf   :  { %97 = vst.msk [vmem:[#allocation2] sm:$0xff] %vm22_vm0, %v95_v7  ;;  %v96_v10 = vadd.f32 %v91_v9, %v26_v6  ;;  %v138_v11 = vpop.f32.mrb[3].mxu0 }
  0xe1   :  { %98 = vst.msk [vmem:[#allocation2 + $0x8] sm:$0xff] %vm22_vm0, %v96_v10 }
  0xe6   :  { %v102_v13 = vld [vmem:[#allocation2] sm:$0xff] }
  0xe7   :  { %v111_v15 = vadd.f32 %v127_v12, %v102_v13 }
  0xe8   :  { %v103_v16 = vld [vmem:[#allocation2 + $0x8] sm:$0xff] }
  0xe9   :  { %v115_v18 = vadd.f32 %v113_v14, %v111_v15  ;;  %v112_v19 = vadd.f32 %v127_v12, %v103_v16 }
  0xeb   :  { %117 = vst.msk [vmem:[%s206_s4] sm:$0xff] %vm22_vm0, %v115_v18  ;;  %v116_v20 = vadd.f32 %v114_v17, %v112_v19 }
  0xed   :  { %118 = vst.msk [vmem:[%s206_s4 + $0x8] sm:$0xff] %vm22_vm0, %v116_v20 }

// kernel: _lambda_.21
= control target key start
LH: loop header
LB: loop body
LE: loop exit
PB: predicated region body
PF: predicated region fallthrough
CT: control target
= control target key end

     0   :  { %vm22_vm0 = vcmask 261120   ;;  %v219_v0 = vmov 0.0   ;;  %vm220_vm1 = vmmov 0   ;;  %s294_s1 = inlined_call_operand.vmem [shape: bf16[128,32], index: 1, kind: input, shape index: {}]   ;;  %s295_s0 = inlined_call_operand.vmem [shape: bf16[16,128], index: 0, kind: input, shape index: {}]   ;;  %s296_s2 = inlined_call_operand.vmem [shape: f32[1,32], index: 2, kind: input, shape index: {}]   ;;  %s297_s3 = inlined_call_operand.vmem [shape: f32[16,32], index: 3, kind: input, shape index: {}]   ;;  %s298_s4 = inlined_call_operand.vmem [shape: f32[16,32], index: 4, kind: output, shape index: {}]  }
   0x1   :  { %188 = vmatprep.subr.bf16.mxu0 %v219_v0  ;;  %v210_v1 = vld [vmem:[%s294_s1] sm:$0xff]   ;;  %204 = vmatprep.mubr.msk.bf16.mxu0 %vm220_vm1, %v219_v0  ;;  %23 = vst.msk [vmem:[#allocation2] sm:$0xff] %vm22_vm0, %v219_v0  ;;  %24 = vst.msk [vmem:[#allocation2 + $0x8] sm:$0xff] %vm22_vm0, %v219_v0  ;;  %v211_v2 = vld [vmem:[%s294_s1 + $0x8] sm:$0xff]  }
   0x2   :  { %189 = vmatpush3.bf16.msra.mxu0 %v210_v1  ;;  %v212_v3 = vld [vmem:[%s294_s1 + $0x10] sm:$0xff]   ;;  %v213_v4 = vld [vmem:[%s294_s1 + $0x18] sm:$0xff]   ;;  %v214_v5 = vld [vmem:[%s294_s1 + $0x20] sm:$0xff]  }
   0x3   :  { %190 = vmatprep.subr.bf16.mxu0 %v219_v0  ;;  %v215_v6 = vld [vmem:[%s294_s1 + $0x28] sm:$0xff]   ;;  %v216_v7 = vld [vmem:[%s294_s1 + $0x30] sm:$0xff]   ;;  %v217_v8 = vld [vmem:[%s294_s1 + $0x38] sm:$0xff]  }
   0x4   :  { %v218_v9 = vld [vmem:[%s295_s0] sm:$0xff]   ;;  %v160_v22 = vld [vmem:[%s297_s3 + $0x8] sm:$0xff] }
   0x5   :  { %v178_v18 = vld [vmem:[%s296_s2] ss:$0 sm:$0xff] }
   0x6   :  { %191 = vmatpush3.bf16.msra.mxu0 %v211_v2  ;;  %v159_v20 = vld [vmem:[%s297_s3] sm:$0xff] }
   0x7   :  { %192 = vmatprep.subr.bf16.mxu0 %v219_v0 }
   0x8   :  { %v25_v10 = vld [vmem:[#allocation2] sm:$0xff]  ;;  %v26_v12 = vld [vmem:[#allocation2 + $0x8] sm:$0xff] }
   0xa   :  { %193 = vmatpush3.bf16.msra.mxu0 %v212_v3 }
   0xb   :  { %194 = vmatprep.subr.bf16.mxu0 %v219_v0 }
   0xe   :  { %195 = vmatpush3.bf16.msra.mxu0 %v213_v4 }
   0xf   :  { %196 = vmatprep.subr.bf16.mxu0 %v219_v0 }
  0x12   :  { %197 = vmatpush3.bf16.msra.mxu0 %v214_v5 }
  0x13   :  { %198 = vmatprep.subr.bf16.mxu0 %v219_v0 }
  0x16   :  { %199 = vmatpush3.bf16.msra.mxu0 %v215_v6 }
  0x17   :  { %200 = vmatprep.subr.bf16.mxu0 %v219_v0 }
  0x1a   :  { %201 = vmatpush3.bf16.msra.mxu0 %v216_v7 }
  0x1b   :  { %202 = vmatprep.subr.bf16.mxu0 %v219_v0 }
  0x1e   :  { %203 = vmatpush3.bf16.msra.mxu0 %v217_v8 }
  0x21   :  { %205 = vmatmul.mubr.bf16.vlgmr.msra.gmra.mrb[0].mxu0 %v218_v9 }
  0xf4   :  { %v133_v11 = vpop.f32.mrb[0].mxu0 }
  0xf5   :  { %v140_v13 = vadd.f32 %v133_v11, %v25_v10  ;;  %v206_v14 = vpop.f32.mrb[1].mxu0 }
  0xf6   :  { %v136_v15 = vpop.f32.mrb[2].mxu0 }
  0xf7   :  { %143 = vst.msk [vmem:[#allocation2] sm:$0xff] %vm22_vm0, %v140_v13  ;;  %v141_v16 = vadd.f32 %v136_v15, %v26_v12  ;;  %v207_v17 = vpop.f32.mrb[3].mxu0 }
  0xf9   :  { %144 = vst.msk [vmem:[#allocation2 + $0x8] sm:$0xff] %vm22_vm0, %v141_v16 }
  0xfe   :  { %v148_v19 = vld [vmem:[#allocation2] sm:$0xff] }
  0xff   :  { %v157_v21 = vadd.f32 %v178_v18, %v148_v19 }
 0x100   :  { %v149_v23 = vld [vmem:[#allocation2 + $0x8] sm:$0xff] }
 0x101   :  { %v161_v24 = vadd.f32 %v159_v20, %v157_v21  ;;  %v158_v25 = vadd.f32 %v178_v18, %v149_v23 }
 0x103   :  { %163 = vst.msk [vmem:[%s298_s4] sm:$0xff] %vm22_vm0, %v161_v24  ;;  %v162_v26 = vadd.f32 %v160_v22, %v158_v25 }
 0x105   :  { %164 = vst.msk [vmem:[%s298_s4 + $0x8] sm:$0xff] %vm22_vm0, %v162_v26 }

// kernel: _lambda_.20
= control target key start
LH: loop header
LB: loop body
LE: loop exit
PB: predicated region body
PF: predicated region fallthrough
CT: control target
= control target key end

     0   :  { %vm27_vm0 = vcmask 261120   ;;  %v214_v15 = vmov 0.0   ;;  %vm215_vm1 = vmmov 0   ;;  %s276_s0 = inlined_call_operand.vmem [shape: f32[16,32], index: 0, kind: input, shape index: {}]   ;;  %s277_s3 = inlined_call_operand.vmem [shape: bf16[32,128], index: 3, kind: input, shape index: {}]   ;;  %s278_s1 = inlined_call_operand.vmem [shape: f32[1,32], index: 1, kind: input, shape index: {}]   ;;  %s279_s2 = inlined_call_operand.vmem [shape: f32[1,32], index: 2, kind: input, shape index: {}]   ;;  %s280_s4 = inlined_call_operand.vmem [shape: f32[1,128], index: 4, kind: input, shape index: {}]   ;;  %s281_s5 = inlined_call_operand.vmem [shape: bf16[16,128], index: 5, kind: output, shape index: {}]  }
   0x1   :  { %v25_v0 = vld [vmem:[%s276_s0] sm:$0xff]  ;;  %v26_v1 = vld [vmem:[%s276_s0 + $0x8] sm:$0xff]  ;;  %194 = vmatprep.subr.bf16.mxu0 %v214_v15  ;;  %198 = vmatprep.mubr.msk.bf16.mxu0 %vm215_vm1, %v214_v15 }
   0x2   :  { %v28_v2 = vsel %vm27_vm0, %v25_v0, 0.0  ;;  %v31_v3 = vsel %vm27_vm0, %v26_v1, 0.0  ;;  %v204_v14 = vld [vmem:[%s277_s3] sm:$0xff]   ;;  %v205_v16 = vld [vmem:[%s277_s3 + $0x8] sm:$0xff]  }
   0x3   :  { %29 = vadd.xlane.f32.xlu0 %v28_v2  ;;  %195 = vmatpush3.bf16.msra.mxu0 %v204_v14  ;;  %v176_v25 = vld [vmem:[%s278_s1] ss:$0 sm:$0xff] }
   0x4   :  { %196 = vmatprep.subr.bf16.mxu0 %v214_v15  ;;  %v177_v29 = vld [vmem:[%s279_s2] ss:$0 sm:$0xff] }
   0x5   :  { %v178_v35 = vld [vmem:[%s280_s4] ss:$0 sm:$0xff] }
   0x7   :  { %32 = vadd.xlane.f32.xlu0 %v31_v3  ;;  %197 = vmatpush3.bf16.msra.mxu0 %v205_v16 }
  0x90   :  { %v30_v4 = vpop.xlane.xlu0 %29 }
  0x91   :  { %v35_v5 = vmul.f32 0.03125, %v30_v4 }
  0x93   :  { %v37_v6 = vsub.f32 %v25_v0, %v35_v5 }
  0x94   :  { %v33_v7 = vpop.xlane.xlu0 %32 }
  0x95   :  { %v36_v8 = vmul.f32 0.03125, %v33_v7  ;;  %v39_v9 = vmul.f32 %v37_v6, %v37_v6 }
  0x97   :  { %v38_v10 = vsub.f32 %v26_v1, %v36_v8  ;;  %v41_v11 = vsel %vm27_vm0, %v39_v9, 0.0 }
  0x98   :  { %42 = vadd.xlane.f32.xlu1 %v41_v11 }
  0x99   :  { %v40_v12 = vmul.f32 %v38_v10, %v38_v10 }
  0x9b   :  { %v44_v13 = vsel %vm27_vm0, %v40_v12, 0.0 }
  0x9c   :  { %45 = vadd.xlane.f32.xlu1 %v44_v13 }
 0x125   :  { %v43_v17 = vpop.xlane.xlu1 %42 }
 0x126   :  { %v47_v18 = vmul.f32 0.03125, %v43_v17 }
 0x128   :  { %v49_v19 = vadd.f32 1e-05, %v47_v18 }
 0x129   :  { %v46_v20 = vpop.xlane.xlu1 %45 }
 0x12a   :  { %206 = vrsqrt.f32 %v49_v19  ;;  %v48_v21 = vmul.f32 0.03125, %v46_v20 }
 0x12c   :  { %v50_v22 = vadd.f32 1e-05, %v48_v21 }
 0x12e   :  { %208 = vrsqrt.f32 %v50_v22 }
 0x134   :  { %v207_v23 = vpop.eup %206 }
 0x135   :  { %v53_v24 = vmul.f32 %v207_v23, %v37_v6 }
 0x137   :  { %v62_v27 = vmul.f32 %v176_v25, %v53_v24 }
 0x138   :  { %v209_v26 = vpop.eup %208 }
 0x139   :  { %v54_v28 = vmul.f32 %v209_v26, %v38_v10  ;;  %v71_v31 = vadd.f32 %v177_v29, %v62_v27 }
 0x13b   :  { %v63_v30 = vmul.f32 %v176_v25, %v54_v28 }
 0x13d   :  { %v72_v32 = vadd.f32 %v177_v29, %v63_v30 }
 0x13f   :  { %v73_v33 = vpack.c.bf16 %v72_v32, %v71_v31 }
 0x141   :  { %74 = vst.msk [vmem:[#allocation2] sm:$0xff] %vm27_vm0, %v73_v33 }
 0x148   :  { %v75_v34 = vld [vmem:[#allocation2] sm:$0xff] }
 0x149   :  { %199 = vmatmul.mubr.msk.bf16.vlgmr.msra.gmra.mrb[0].mxu0 %vm27_vm0, %v75_v34 }
 0x21c   :  { %v137_v36 = vpop.f32.mrb[0].mxu0 }
 0x21d   :  { %v138_v37 = vadd.f32 %v178_v35, %v137_v36  ;;  %v200_v38 = vpop.f32.mrb[1].mxu0 }
 0x21e   :  { %v140_v39 = vpop.f32.mrb[2].mxu0 }
 0x21f   :  { %v146_v40 = vmul.f32 0.044715, %v138_v37  ;;  %v141_v41 = vadd.f32 %v178_v35, %v140_v39  ;;  %v201_v42 = vpop.f32.mrb[3].mxu0  ;;  %v144_v55 = vmul.f32 0.5, %v138_v37 }
 0x221   :  { %v148_v43 = vmul.f32 %v146_v40, %v138_v37  ;;  %v147_v44 = vmul.f32 0.044715, %v141_v41  ;;  %v145_v56 = vmul.f32 0.5, %v141_v41 }
 0x223   :  { %v150_v45 = vmul.f32 %v148_v43, %v138_v37  ;;  %v149_v46 = vmul.f32 %v147_v44, %v141_v41 }
 0x225   :  { %v152_v47 = vadd.f32 %v150_v45, %v138_v37  ;;  %v151_v48 = vmul.f32 %v149_v46, %v141_v41 }
 0x227   :  { %v154_v49 = vmul.f32 0.7978846, %v152_v47  ;;  %v153_v50 = vadd.f32 %v151_v48, %v141_v41 }
 0x229   :  { %210 = vtanh.f32 %v154_v49  ;;  %v155_v51 = vmul.f32 0.7978846, %v153_v50 }
 0x22b   :  { %212 = vtanh.f32 %v155_v51 }
 0x233   :  { %v211_v52 = vpop.eup %210 }
 0x234   :  { %v158_v53 = vadd.f32 1.0, %v211_v52 }
 0x235   :  { %v213_v54 = vpop.eup %212 }
 0x236   :  { %v159_v57 = vadd.f32 1.0, %v213_v54  ;;  %v160_v58 = vmul.f32 %v158_v53, %v144_v55 }
 0x238   :  { %v161_v59 = vmul.f32 %v159_v57, %v145_v56 }
 0x23a   :  { %v189_v60 = vpack.c.bf16 %v161_v59, %v160_v58 }
 0x23c   :  { %190 = vst [vmem:[%s281_s5] sm:$0xff] %v189_v60  }

// kernel: _lambda_.18
= control target key start
LH: loop header
LB: loop body
LE: loop exit
PB: predicated region body
PF: predicated region fallthrough
CT: control target
= control target key end

     0   :  { %s1093_s24 = smov 0   ;;  %s1095_s25 = smov 0   ;;  %s1185_s0 = inlined_call_operand.vmem [shape: bf16[2,4,8,8], index: 0, kind: input, shape index: {}]   ;;  %s1186_s1 = inlined_call_operand.vmem [shape: bf16[2,4,8,8], index: 1, kind: input, shape index: {}]   ;;  %s1187_s2 = inlined_call_operand.vmem [shape: bf16[2,4,8,8], index: 2, kind: input, shape index: {}]   ;;  %s1188_s3 = inlined_call_operand.vmem [shape: f32[8,4], index: 3, kind: input, shape index: {}, may-alias: {3,5}]   ;;  %s1189_s4 = inlined_call_operand.vmem [shape: f32[8,4], index: 4, kind: input, shape index: {}, may-alias: {4,6}]   ;;  %s1190_s5 = inlined_call_operand.vmem [shape: f32[8,4], index: 5, kind: input, shape index: {}, may-alias: {3,5}]   ;;  %s1191_s6 = inlined_call_operand.vmem [shape: f32[8,4], index: 6, kind: input, shape index: {}, may-alias: {4,6}]   ;;  %s1192_s7 = inlined_call_operand.vmem [shape: bf16[2,4,8,8], index: 7, kind: output, shape index: {}]  }
   0x1   :  { %s1097_s26 = smov 0   ;;  %s1099_s27 = smov 0  }
   0x2   :  { %s1101_s28 = smov 0  }
   0x3 LB: > { %s39_s29 = sadd.s32 1, %s1037_s26  ;;  %s43_s30 = sadd.s32 1, %s1041_s27  ;;  %s1045_s28 = sphi %s1101_s28, %s17_s28   ;;  %s1041_s27 = sphi %s1099_s27, %s1196_s27   ;;  %s1037_s26 = sphi %s1097_s26, %s1195_s26   ;;  %s1033_s25 = sphi %s1095_s25, %s1194_s25   ;;  %s1029_s24 = sphi %s1093_s24, %s1193_s24  }
   0x4   : > { %p41_p0 = scmp.ge.s32.totalorder %s39_s29, 4  ;;  %p924_p1 = scmp.ge.s32.totalorder %s1045_s28, 1 }
   0x5   : > { %p353_p2 = scmp.lt.s32.totalorder %s1045_s28, 9 }
   0x6   : > { %s1198_s29 = smov (%p41_p0, %s39_s29), 0  ;;  %s1200_s30 = smov (!%p41_p0, %s43_s30), %s1041_s27 }
   0x7   : > { %p354_p3 = pnand %p924_p1, %p353_p2  ;;  %p45_p4 = scmp.ge.s32.totalorder %s1200_s30, 2 }
   0x8   : > { %v538_v0 = vld [vmem:[%s1191_s6] sm:$0xff] (!%p354_p3)  ;;  %p435_p5 = scmp.lt.s32.totalorder (!%p354_p3), %s1033_s25, 1  ;;  %s1047_s12 = smov (!%p354_p3), 4   ;;  %vm503_vm0 = vcmask (!%p354_p3), 64512   ;;  %v1048_v6 = vmov (!%p354_p3), 0.0   ;;  %vm1050_vm1 = vmmov (!%p354_p3), 0  }
   0x9   : > { %s1202_s30 = smov (%p45_p4, %s1200_s30), 0  ;;  %357 = sbr.rel (%p354_p3) target bundleno = 1054 (0x41e), region = 48 }
   0xa   : > { %v537_v1 = vld [vmem:[%s1190_s5] sm:$0xff] (!%p354_p3)  ;;  %541 = vrot.lane.b32.xlu0 (!%p354_p3), %v538_v0, %s1047_s12  ;;  %p437_p6 = scmp.lt.s32.totalorder (!%p354_p3), %s1029_s24, 3  ;;  %941 = vmatprep.subr.bf16.mxu0 (!%p354_p3), %v1048_v6  ;;  %504 = vst.msk [vmem:[#allocation4] sm:$0xff] (!%p354_p3), %vm503_vm0, %v1048_v6  ;;  %vm533_vm2 = vcmask (!%p354_p3), 31744   ;;  %vm500_vm3 = vcmask (!%p354_p3), 7168   ;;  %v1051_v35 = vmov (!%p354_p3), -inf  }
   0xb   : > { %551 = vrot.lane.b32.xlu1 (!%p354_p3), %v537_v1, %s1047_s12  ;;  %v510_v2 = vld [vmem:[%s1189_s4] sm:$0xff] (!%p354_p3)  ;;  %947 = vmatprep.subr.bf16.mxu1 (!%p354_p3), %v1048_v6  ;;  %501 = vst.msk [vmem:[#allocation2] sm:$0xff] (!%p354_p3), %vm500_vm3, %v1051_v35  ;;  %502 = vst.msk [vmem:[#allocation3] sm:$0xff] (!%p354_p3), %vm500_vm3, %v1048_v6  ;;  %v1052_v41 = vmov (!%p354_p3), 0   ;;  %vm646_vm4 = vcmask (!%p354_p3), 1043456   ;;  %vm706_vm5 = vcmask (!%p354_p3), 60416  }
   0xc   : > { %v509_v11 = vld [vmem:[%s1188_s3] sm:$0xff] (!%p354_p3)  ;;  %943 = vmatprep.mubr.msk.bf16.mxu0 (!%p354_p3), %vm1050_vm1, %v1048_v6  ;;  %949 = vmatprep.mubr.msk.bf16.mxu1 (!%p354_p3), %vm1050_vm1, %v1048_v6 }
   0xd   : > { %999 = vset.pattern.permute.xlu1 (!%p354_p3), %v1052_v41  ;;  %1000 = vset.pattern.permute.xlu0 (!%p354_p3), %v1052_v41 }
   0xe   : > { %513 = vrot.lane.b32.xlu0 (!%p354_p3), %v510_v2, %s1047_s12 }
  0x10   : > { %s1204_s25 = smov (!%p435_p5, %s1033_s25), 1  ;;  %s1206_s24 = smov (!%p437_p6, %s1029_s24), 3 }
  0x11   : > { %s925_s15 = sshll.u32 %s1204_s25, 2  ;;  %v634_v62 = vld [vmem:[#allocation4] sm:$0xff] }
  0x12   : > { %s443_s16 = sadd.s32 %s925_s15, %s1206_s24  ;;  %s1049_s24 = smov 124   ;;  %v610_v42 = vld [vmem:[#allocation2] sm:$0xff]  ;;  %v626_v56 = vld [vmem:[#allocation3] sm:$0xff] }
  0x13   : > { %s1135_s17 = sshll.u32 %s443_s16, 2 }
  0x14   : > { %s456_s20 = scalar_lea.vmem %s1186_s1, %s1135_s17  ;;  %s445_s23 = scalar_lea.vmem %s1185_s0, %s1135_s17 }
  0x15   : > { %v507_v3 = vld [vmem:[%s456_s20] sm:$0xf]  ;;  %s467_s11 = scalar_lea.vmem %s1187_s2, %s1135_s17  ;;  %s494_s14 = scalar_lea.vmem %s1192_s7, %s1135_s17 }
  0x16   : > { %v508_v4 = vunpack.c.l.bf16 %v507_v3  ;;  %v505_v7 = vld [vmem:[%s445_s23] sm:$0xf] }
  0x17   : > { %v506_v9 = vunpack.c.l.bf16 %v505_v7  ;;  %v642_v47 = vld [vmem:[%s467_s11] sm:$0xf] }
  0x18   : > { %v555_v5 = vmul.f32 %v538_v0, %v508_v4  ;;  %v539_v16 = vmul.f32 %v537_v1, %v508_v4  ;;  %v648_v48 = vsel %vm646_vm4, %v642_v47, 0 }
  0x19   : > { %v527_v14 = vmul.f32 %v510_v2, %v506_v9  ;;  %v511_v23 = vmul.f32 %v509_v11, %v506_v9  ;;  %948 = vmatpush3.bf16.msra.mxu1 %v648_v48 }
  0x1a   : > { %557 = vrot.lane.b32.xlu0 %v555_v5, %s1047_s12 }
  0x7c   : > { %v542_v8 = vpop.permute.xlu0 %541 }
  0x7d   : > { %v544_v10 = vmul.f32 %v542_v8, %v508_v4  ;;  %v552_v15 = vpop.permute.xlu1 %551 }
  0x7e   : > { %v554_v17 = vmul.f32 %v552_v15, %v508_v4 }
  0x7f   : > { %546 = vrot.lane.b32.xlu1 %v544_v10, %s1049_s24 }
  0x80   : > { %v514_v12 = vpop.permute.xlu0 %513 }
  0x81   : > { %v516_v13 = vmul.f32 %v514_v12, %v506_v9 }
  0x83   : > { %523 = vrot.lane.b32.xlu1 %v509_v11, %s1047_s12  ;;  %518 = vrot.lane.b32.xlu0 %v516_v13, %s1049_s24 }
  0x87   : > { %529 = vrot.lane.b32.xlu1 %v527_v14, %s1047_s12 }
  0x8c   : > { %v558_v18 = vpop.permute.xlu0 %557 }
  0x8d   : > { %v560_v20 = vadd.f32 %v558_v18, %v554_v17 }
  0xf1   : > { %v547_v19 = vpop.permute.xlu1 %546 }
  0xf2   : > { %v549_v21 = vsub.f32 %v539_v16, %v547_v19 }
  0xf4   : > { %v561_v22 = vsel %vm533_vm2, %v549_v21, %v560_v20 }
  0xf5   : > { %v524_v24 = vpop.permute.xlu1 %523  ;;  %v562_v25 = vpack.c.bf16 %v561_v22, %v561_v22  ;;  %v519_v26 = vpop.permute.xlu0 %518 }
  0xf6   : > { %v526_v28 = vmul.f32 %v524_v24, %v506_v9  ;;  %v521_v29 = vsub.f32 %v511_v23, %v519_v26 }
  0xf7   : > { %v568_v27 = vsel %vm503_vm0, %v562_v25, 0 }
  0xf8   : > { %942 = vmatpush3.bf16.xpose.msra.mxu0 %v568_v27 }
  0xf9   : > { %v530_v30 = vpop.permute.xlu1 %529 }
  0xfa   : > { %v532_v31 = vadd.f32 %v530_v30, %v526_v28 }
  0xfc   : > { %v534_v32 = vsel %vm533_vm2, %v521_v29, %v532_v31 }
  0xfd   : > { %v535_v33 = vmul.f32 0.35355338, %v534_v32 }
  0xff   : > { %v536_v34 = vpack.c.bf16 %v535_v33, %v535_v33 }
 0x101   : > { %944 = vmatmul.mubr.msk.bf16.vlgmr.msra.gmra.mrb[0].mxu0 %vm503_vm0, %v536_v34 }
 0x1d4   : > { %v604_v36 = vpop.f32.mrb[0].mxu0 }
 0x1d5   : > { %v945_v37 = vpop.f32.mrb[1].mxu0  ;;  %v611_v38 = vsel %vm503_vm0, %v604_v36, -inf }
 0x1d6   : > { %612 = vmax.xlane.f32.xlu0 %v611_v38  ;;  %v607_v39 = vpop.f32.mrb[2].mxu0 }
 0x1d7   : > { %v946_v40 = vpop.f32.mrb[3].mxu0 }
 0x263   : > { %v613_v43 = vpop.xlane.xlu0 %612 }
 0x264   : > { %v614_v44 = vmax.f32 %v610_v42, %v613_v43 }
 0x266   : > { %v615_v45 = vsub.f32 %v610_v42, %v614_v44  ;;  %692 = vst.msk [vmem:[#allocation2] sm:$0xff] %vm500_vm3, %v614_v44  ;;  %620 = vperm.xlu1 %999, %v614_v44  }
 0x268   : > { %v616_v46 = vmul.f32 1.442695, %v615_v45 }
 0x26a   : > { %1001 = vpow2.f32 %v616_v46 }
 0x274   : > { %v1002_v49 = vpop.eup %1001 }
 0x275   : > { %637 = vperm.xlu0 %1000, %v1002_v49   ;;  %v627_v57 = vmul.f32 %v1002_v49, %v626_v56 }
 0x2e5   : > { %v621_v50 = vpop.permute.xlu1 %620 }
 0x2e6   : > { %v623_v51 = vsub.f32 %v604_v36, %v621_v50 }
 0x2e8   : > { %v624_v52 = vmul.f32 1.442695, %v623_v51 }
 0x2ea   : > { %1003 = vpow2.f32 %v624_v52 }
 0x2f4   : > { %v1004_v53 = vpop.eup %1003  ;;  %v638_v63 = vpop.permute.xlu0 %637 }
 0x2f5   : > { %v628_v54 = vsel %vm503_vm0, %v1004_v53, 0.0  ;;  %v641_v55 = vpack.c.bf16 %v1004_v53, %v1004_v53  ;;  %v640_v0 = vmul.f32 %v638_v63, %v634_v62 }
 0x2f6   : > { %629 = vadd.xlane.f32.xlu1 %v628_v54 }
 0x2f7   : > { %950 = vmatmul.mubr.msk.bf16.vlgmr.msra.gmra.mrb[0].mxu1 %vm503_vm0, %v641_v55 }
 0x383   : > { %v630_v58 = vpop.xlane.xlu1 %629 }
 0x384   : > { %v631_v59 = vadd.f32 %v630_v58, %v627_v57 }
 0x386   : > { %633 = vst.msk [vmem:[#allocation3] sm:$0xff] %vm500_vm3, %v631_v59 }
 0x38d   : > { %v697_v60 = vld [vmem:[#allocation3] sm:$0xff] }
 0x38e   : > { %1005 = vrcp.f32 %v697_v60 }
 0x398   : > { %v1006_v61 = vpop.eup %1005 }
 0x399   : > { %701 = vperm.xlu1 %999, %v1006_v61  }
 0x3ca   : > { %v684_v1 = vpop.f32.mrb[0].mxu1 }
 0x3cb   : > { %v690_v2 = vadd.f32 %v684_v1, %v640_v0  ;;  %v951_v3 = vpop.f32.mrb[1].mxu1 }
 0x3cc   : > { %v687_v4 = vpop.f32.mrb[2].mxu1 }
 0x3cd   : > { %691 = vst.msk [vmem:[#allocation4] sm:$0xff] %vm503_vm0, %v690_v2  ;;  %v952_v5 = vpop.f32.mrb[3].mxu1 }
 0x3d4   : > { %v696_v6 = vld [vmem:[#allocation4] sm:$0xff] }
 0x418   : > { %v702_v7 = vpop.permute.xlu1 %701 }
 0x419   : > { %v704_v8 = vmul.f32 %v702_v7, %v696_v6 }
 0x41b   : > { %v705_v9 = vpack.c.bf16 %v704_v8, %v704_v8 }
 0x41d   : > { %707 = vst.msk [vmem:[%s494_s14] sm:$0xf] %vm706_vm5, %v705_v9 }
 0x41e PF: > { %s17_s28 = sadd.s32 1, %s1045_s28   ;;  %s1193_s24 = smov %s1037_s26 }
 0x41f   : > { %p14_p7 = scmp.ge.s32.totalorder %s17_s28, 10   ;;  %s1194_s25 = smov %s1041_s27 }
 0x420   : > { %s1195_s26 = smov %s1198_s29  ;;  %s1196_s27 = smov %s1202_s30 }
 0x421   :  { %16 = sbr.rel (!%p14_p7) target bundleno = 3 (0x3), region = 104 }

// kernel: _lambda_.27
= control target key start
LH: loop header
LB: loop body
LE: loop exit
PB: predicated region body
PF: predicated region fallthrough
CT: control target
= control target key end

     0   :  { %vm17_vm0 = vcmask 261120   ;;  %s167_s0 = inlined_call_operand.vmem [shape: f32[16,32], index: 0, kind: input, shape index: {}]   ;;  %s168_s1 = inlined_call_operand.vmem [shape: f32[1,32], index: 1, kind: input, shape index: {}]   ;;  %s169_s2 = inlined_call_operand.vmem [shape: f32[1,32], index: 2, kind: input, shape index: {}]   ;;  %s170_s3 = inlined_call_operand.hbm [shape: f32[16,32], index: 3, kind: output, shape index: {}]  }
   0x1   :  { %v15_v0 = vld [vmem:[%s167_s0] sm:$0xff]  ;;  %v16_v1 = vld [vmem:[%s167_s0 + $0x8] sm:$0xff] }
   0x2   :  { %8 = vsyncpa [#allocation3], 0  ;;  %v18_v2 = vsel %vm17_vm0, %v15_v0, 0.0  ;;  %v21_v3 = vsel %vm17_vm0, %v16_v1, 0.0  ;;  %v81_v21 = vld [vmem:[%s168_s1] ss:$0 sm:$0xff] }
   0x3   :  { %19 = vadd.xlane.f32.xlu0 %v18_v2  ;;  %v82_v23 = vld [vmem:[%s169_s2] ss:$0 sm:$0xff]  ;;  %s114_s19 = smov [#allocation2]  }
   0x4   :  { %s70_s20 = sshll.u32 %s114_s19, 4  ;;  %s71_s20 = int_to_ptr.vmem [resolvable:$true] %s70_s20 }
   0x5   :  { %s90_s21 = scalar_lea.vmem %s71_s20, 256  ;;  %p95_p1 = scmp.lt.s32.totalorder %s71_s20, %s71_s20 }
   0x6   :  { %p91_p0 = scmp.ne.s32.totalorder %s71_s20, %s90_s21  ;;  %p96_p2 = scmp.lt.s32.totalorder %s90_s21, %s90_s21 }
   0x7   :  { %22 = vadd.xlane.f32.xlu0 %v21_v3 }
   0x8   :  { %p97_p3 = por %p96_p2, %p95_p1 }
   0xa   :  { %p98_p4 = pnand %p97_p3, %p91_p0 }
  0x90   :  { %v20_v4 = vpop.xlane.xlu0 %19 }
  0x91   :  { %v25_v5 = vmul.f32 0.03125, %v20_v4 }
  0x93   :  { %v27_v6 = vsub.f32 %v15_v0, %v25_v5 }
  0x94   :  { %v23_v7 = vpop.xlane.xlu0 %22 }
  0x95   :  { %v26_v8 = vmul.f32 0.03125, %v23_v7  ;;  %v29_v9 = vmul.f32 %v27_v6, %v27_v6 }
  0x97   :  { %v28_v10 = vsub.f32 %v16_v1, %v26_v8  ;;  %v31_v11 = vsel %vm17_vm0, %v29_v9, 0.0 }
  0x98   :  { %32 = vadd.xlane.f32.xlu1 %v31_v11 }
  0x99   :  { %v30_v12 = vmul.f32 %v28_v10, %v28_v10 }
  0x9b   :  { %v34_v13 = vsel %vm17_vm0, %v30_v12, 0.0 }
  0x9c   :  { %35 = vadd.xlane.f32.xlu1 %v34_v13 }
 0x125   :  { %v33_v14 = vpop.xlane.xlu1 %32 }
 0x126   :  { %v37_v15 = vmul.f32 0.03125, %v33_v14 }
 0x128   :  { %v39_v16 = vadd.f32 1e-05, %v37_v15 }
 0x129   :  { %v36_v17 = vpop.xlane.xlu1 %35 }
 0x12a   :  { %86 = vrsqrt.f32 %v39_v16  ;;  %v38_v18 = vmul.f32 0.03125, %v36_v17 }
 0x12c   :  { %v40_v19 = vadd.f32 1e-05, %v38_v18 }
 0x12e   :  { %88 = vrsqrt.f32 %v40_v19 }
 0x134   :  { %v87_v20 = vpop.eup %86 }
 0x135   :  { %v43_v22 = vmul.f32 %v87_v20, %v27_v6 }
 0x137   :  { %v52_v24 = vmul.f32 %v81_v21, %v43_v22 }
 0x138   :  { %v89_v25 = vpop.eup %88 }
 0x139   :  { %v44_v26 = vmul.f32 %v89_v25, %v28_v10  ;;  %v61_v27 = vadd.f32 %v82_v23, %v52_v24 }
 0x13b   :  { %v53_v28 = vmul.f32 %v81_v21, %v44_v26  ;;  %63 = vst.msk [vmem:[#allocation2] sm:$0xff] %vm17_vm0, %v61_v27 }
 0x13d   :  { %v62_v29 = vadd.f32 %v82_v23, %v53_v28 }
 0x13f   :  { %64 = vst.msk [vmem:[#allocation2 + $0x8] sm:$0xff] %vm17_vm0, %v62_v29 }
 0x140   :  { %101 = shalt.err (!%p98_p4)
}
 0x141   :  { %s102_s22 = scalar_lea.hbm %s170_s3, 256 }
 0x142   :  { %p103_p5 = scmp.ne.s32.totalorder %s170_s3, %s102_s22  ;;  %p106_p6 = scmp.lt.u32.totalorder %s102_s22, %s170_s3 }
 0x144   :  { %p108_p7 = pnand %p106_p6, %p103_p5 }
 0x146   :  { %111 = shalt.err (!%p108_p7)
}
 0x147   :  { %s115_s27 = smov 128   ;;  %s116_s28 = smov 8  }
 0x148   :  { %76 = dma.vmem_to_hbm [thread:$0]  %s71_s20, 256, %s170_s3, [#allocation3], %s115_s27, %s115_s27, %s116_s28  }
 0x149   :  { %112 = dma.done.wait [#allocation3], 256  }
 0x14a   :  { %113 = vsyncadd [#allocation3], 4294967040 }
 0x14b   :  { %80 = vsyncpa [#allocation3], 1 }

</bundles_post_ra>
